<compile_context>
chip_gen: v7x
topology: tpu7x:2x2x1
jax: 0.10.0
libtpu: 0.0.40
codegen_flags: <defaults>
</compile_context>

<pallas_src>
import jax
import jax.numpy as jnp
import numpy as np
from jax import lax
from jax.experimental import pallas as pl
from jax.experimental.pallas import tpu as pltpu

EPS = 1e-5


# --------------------------------------------------------------------------
# generation-aware VMEM budget / lane-tile choice
# --------------------------------------------------------------------------
def _vmem_limit_bytes():
    """~75% of physical VMEM: ~48 MiB on v7x (64 MiB), 96 MiB on v5e/v6e (128 MiB)."""
    try:
        cap = int(pltpu.get_tpu_info().vmem_capacity_bytes)
    except Exception:
        cap = 64 * 1024 * 1024          # conservative (v7x-sized) fallback
    return max(32 * 1024 * 1024, min(3 * cap // 4, 100 * 1024 * 1024))


def _pick_lane_tile(S, N):
    """Lane tile for the 1x1-conv passes: a multiple of 128 dividing S, capped at
    2048 lanes, shrunk (never below 128) until the (N, S//TS) grid has >= 4 steps
    (>= 2 steps per TensorCore on v7x's 2-TC chips) so the auto-pipeline has
    something to overlap.  Large-S cases keep >= 512 lanes (HBM-roofline sweet
    spot)."""
    if S % 128 != 0:
        return S                        # full-image slabs (see demo-shape note above)
    ts = min(S, 2048)
    while ts > 128 and (S % ts != 0 or N * (S // ts) < 4):
        ts -= 128
    return ts


def _tap_masks(H, W):
    """(9, 1, S) f32 validity masks for the 9 taps of a 3x3 / pad-1 conv,
    indexed by t = i*3 + j (dy = i-1, dx = j-1).  Precomputed once on the host
    and kept VMEM-resident (constant index_map)."""
    S = H * W
    yy, xx = np.divmod(np.arange(S), W)
    m = np.ones((9, 1, S), np.float32)
    for i in range(3):
        for j in range(3):
            dy, dx = i - 1, j - 1
            ok = (yy + dy >= 0) & (yy + dy <= H - 1) & (xx + dx >= 0) & (xx + dx <= W - 1)
            m[i * 3 + j, 0, :] = ok.astype(np.float32)
    return m


def _bn_fold(sum_c, sumsq_c, count, gamma, beta):
    """Exact full-batch train-mode BN (biased variance) folded to scale/shift."""
    m = sum_c / count
    v = sumsq_c / count - m * m                     # single-pass variance, f32
    inv = lax.rsqrt(v + EPS)
    scale = gamma * inv
    shift = beta - m * scale
    return scale.reshape(-1, 1), shift.reshape(-1, 1)


# --------------------------------------------------------------------------
# kernels
# --------------------------------------------------------------------------
def _bn_relu_conv1x1_kernel(x_ref, scale_ref, shift_ref, w_ref, cb_ref,
                            y_ref, stats_ref):
    """y = W @ relu(x*scale + shift) + cb, stored bf16; plus partial (sum, sumsq)
    of the stored (bf16-rounded) activations for the next BatchNorm."""
    a = jnp.maximum(x_ref[0] * scale_ref[...] + shift_ref[...], 0.0)      # f32 (Cin,TS)
    y = jnp.dot(w_ref[...], a.astype(w_ref.dtype),                        # bf16 MXU
                preferred_element_type=jnp.float32) + cb_ref[...]         # f32 (P,TS)
    yb = y.astype(y_ref.dtype)
    y_ref[0] = yb
    yf = yb.astype(jnp.float32)       # stats of exactly what the next pass reads
    stats_ref[0, 0, :, 0:1] = jnp.sum(yf, axis=1, keepdims=True)
    stats_ref[0, 0, :, 1:2] = jnp.sum(yf * yf, axis=1, keepdims=True)


def _make_bn_relu_conv3x3_kernel(H, W):
    """3x3 conv (stride 1, pad 1) on a per-image (P, S) slab, S = H*W on lanes:
    nine accumulating bf16 MXU matmuls over lane-rolled (XLU) + boundary-masked
    taps.  No im2col scratch, no padded buffer, no full-buffer zeroing.
    (Production sizes: add output-channel tiling or halo'd row tiling here.)"""
    S = H * W

    def kernel(h_ref, mask_ref, scale_ref, shift_ref, w_ref, cb_ref,
               y_ref, stats_ref):
        P = h_ref.shape[1]
        a = jnp.maximum(h_ref[0].astype(jnp.float32) * scale_ref[...]
                        + shift_ref[...], 0.0)                            # f32 (P,S)
        acc = jnp.zeros((P, S), jnp.float32)
        for i in range(3):                 # kernel row    -> dy = i - 1
            for j in range(3):             # kernel column -> dx = j - 1
                t = i * 3 + j
                k = (i - 1) * W + (j - 1)  # flat lane shift of tap (dy, dx)
                # rolled[s] = a[(s + k) mod S]  (np.roll semantics)
                tap = a if k == 0 else pltpu.roll(a, shift=(-k) % S, axis=1)
                if t != 4:                 # center tap needs no boundary mask
                    tap = tap * mask_ref[t]
                acc = acc + jnp.dot(w_ref[t], tap.astype(w_ref.dtype),
                                    preferred_element_type=jnp.float32)
        y = acc + cb_ref[...]
        yb = y.astype(y_ref.dtype)
        y_ref[0] = yb
        yf = yb.astype(jnp.float32)
        stats_ref[0, :, 0:1] = jnp.sum(yf, axis=1, keepdims=True)
        stats_ref[0, :, 1:2] = jnp.sum(yf * yf, axis=1, keepdims=True)

    return kernel


def _bn_relu_conv1x1_residual_kernel(h_ref, x_ref, scale_ref, shift_ref,
                                     w_ref, cb_ref, out_ref):
    """out = W @ relu(h*scale + shift) + cb + x  (final 1x1 conv + residual)."""
    a = jnp.maximum(h_ref[0].astype(jnp.float32) * scale_ref[...]
                    + shift_ref[...], 0.0)
    y = jnp.dot(w_ref[...], a.astype(w_ref.dtype),
                preferred_element_type=jnp.float32) + cb_ref[...]
    out_ref[0] = y + x_ref[0]


# --------------------------------------------------------------------------
# wrapper
# --------------------------------------------------------------------------
@jax.jit
def bottleneck_forward(x_nchw, params):
    """x_nchw: (N, Cin, H, W) float32 (PyTorch layout). Returns NCHW float32."""
    N, Cin, H, W = x_nchw.shape
    S = H * W
    P = params["w1"].shape[0]          # planes
    Cout = params["w3"].shape[0]       # planes * 4
    assert Cout == Cin, "residual add (downsample=None) requires inplanes == planes*4"
    count = float(N * S)

    TS = _pick_lane_tile(S, N)
    nS = S // TS
    vmem_limit = _vmem_limit_bytes()

    # free reshape: NCHW -> (N, C, S); S on the lane axis, no transposes anywhere
    x = x_nchw.reshape(N, Cin, S).astype(jnp.float32)

    # parameters: matmul operands in bf16 (MXU-native); affine/bias terms in f32
    g1 = params["g1"].astype(jnp.float32); b1 = params["b1"].astype(jnp.float32)
    g2 = params["g2"].astype(jnp.float32); b2 = params["b2"].astype(jnp.float32)
    g3 = params["g3"].astype(jnp.float32); b3 = params["b3"].astype(jnp.float32)
    w1 = params["w1"].astype(jnp.bfloat16)                            # (P, Cin)
    w3 = params["w3"].astype(jnp.bfloat16)                            # (Cout, P)
    # OIHW (P, P, 3, 3) -> (9, P, P): slab t = i*3 + j holds tap (i, j)
    w2 = params["w2"].transpose(2, 3, 0, 1).reshape(9, P, P).astype(jnp.bfloat16)
    cb1 = params["cb1"].reshape(P, 1).astype(jnp.float32)
    cb2 = params["cb2"].reshape(P, 1).astype(jnp.float32)
    cb3 = params["cb3"].reshape(Cout, 1).astype(jnp.float32)
    masks = jnp.asarray(_tap_masks(H, W))                             # (9, 1, S) f32

    # ---- BN1 statistics: one plain-XLA sweep of x (same HBM traffic as a
    #      stats-only pallas_call, but no extra launch / per-step overhead) ----
    m1 = jnp.mean(x, axis=(0, 2))
    v1 = jnp.mean(jnp.square(x - m1[None, :, None]), axis=(0, 2))
    inv1 = lax.rsqrt(v1 + EPS)
    scale1 = (g1 * inv1).reshape(Cin, 1)
    shift1 = (b1 - m1 * g1 * inv1).reshape(Cin, 1)

    cp2 = pltpu.CompilerParams(dimension_semantics=("parallel", "parallel"),
                               vmem_limit_bytes=vmem_limit)
    cp1 = pltpu.CompilerParams(dimension_semantics=("parallel",),
                               vmem_limit_bytes=vmem_limit)

    img = lambda c, ts: pl.BlockSpec((1, c, ts), lambda n, s: (n, 0, s))
    cst2 = lambda r, c: pl.BlockSpec((r, c), lambda n, s: (0, 0))

    # ---- pass 1: h1 = conv1(relu(bn1(x)))  (bf16) + packed BN2 partial stats ----
    h1, st2 = pl.pallas_call(
        _bn_relu_conv1x1_kernel,
        grid=(N, nS),
        in_specs=[img(Cin, TS), cst2(Cin, 1), cst2(Cin, 1),
                  cst2(P, Cin), cst2(P, 1)],
        out_specs=(img(P, TS),
                   pl.BlockSpec((1, 1, P, 2), lambda n, s: (n, s, 0, 0))),
        out_shape=(jax.ShapeDtypeStruct((N, P, S), jnp.bfloat16),
                   jax.ShapeDtypeStruct((N, nS, P, 2), jnp.float32)),
        compiler_params=cp2,
        cost_estimate=pl.CostEstimate(
            flops=N * S * (3 * Cin + 2 * Cin * P + 3 * P), transcendentals=0,
            bytes_accessed=N * S * (4 * Cin + 2 * P)),
    )(x, scale1, shift1, w1, cb1)
    scale2, shift2 = _bn_fold(jnp.sum(st2[..., 0], axis=(0, 1)),
                              jnp.sum(st2[..., 1], axis=(0, 1)), count, g2, b2)

    # ---- pass 2: h2 = conv2(relu(bn2(h1)))  (3x3 via rolled taps, bf16) ----
    h2, st3 = pl.pallas_call(
        _make_bn_relu_conv3x3_kernel(H, W),
        grid=(N,),
        in_specs=[pl.BlockSpec((1, P, S), lambda n: (n, 0, 0)),
                  pl.BlockSpec((9, 1, S), lambda n: (0, 0, 0)),
                  pl.BlockSpec((P, 1), lambda n: (0, 0)),
                  pl.BlockSpec((P, 1), lambda n: (0, 0)),
                  pl.BlockSpec((9, P, P), lambda n: (0, 0, 0)),
                  pl.BlockSpec((P, 1), lambda n: (0, 0))],
        out_specs=(pl.BlockSpec((1, P, S), lambda n: (n, 0, 0)),
                   pl.BlockSpec((1, P, 2), lambda n: (n, 0, 0))),
        out_shape=(jax.ShapeDtypeStruct((N, P, S), jnp.bfloat16),
                   jax.ShapeDtypeStruct((N, P, 2), jnp.float32)),
        compiler_params=cp1,
        cost_estimate=pl.CostEstimate(
            flops=N * S * (3 * P + 18 * P * P + 10 * P), transcendentals=0,
            bytes_accessed=N * S * 4 * P + 9 * S * 4),
    )(h1, masks, scale2, shift2, w2, cb2)
    scale3, shift3 = _bn_fold(jnp.sum(st3[..., 0], axis=0),
                              jnp.sum(st3[..., 1], axis=0), count, g3, b3)

    # ---- pass 3: out = conv3(relu(bn3(h2))) + x  (f32, aliased onto x's buffer) ----
    out = pl.pallas_call(
        _bn_relu_conv1x1_residual_kernel,
        grid=(N, nS),
        in_specs=[img(P, TS), img(Cin, TS),
                  cst2(P, 1), cst2(P, 1), cst2(Cout, P), cst2(Cout, 1)],
        out_specs=img(Cout, TS),
        out_shape=jax.ShapeDtypeStruct((N, Cout, S), jnp.float32),
        input_output_aliases={1: 0},          # residual x reuses the output buffer
        compiler_params=cp2,
        cost_estimate=pl.CostEstimate(
            flops=N * S * (3 * P + 2 * P * Cout + 2 * Cout), transcendentals=0,
            bytes_accessed=N * S * (2 * P + 8 * Cout)),
    )(h2, x, scale3, shift3, w3, cb3)

    return out.reshape(N, Cout, H, W)          # free reshape back to NCHW


# --------------------------------------------------------------------------
# pure-JAX references for the numerical checks
# --------------------------------------------------------------------------
def ref_forward(x_nchw, params, *, bf16_intermediates):
    """bf16_intermediates=True mirrors the kernel's numeric path (bf16 weights /
    matmul operands / stored activations, f32 accumulation and BN statistics);
    False is the plain f32 semantics of the original torch module."""
    x = x_nchw.astype(jnp.float32)
    P = params["w1"].shape[0]
    Cin = params["w1"].shape[1]
    Cout = params["w3"].shape[0]
    op_dt = jnp.bfloat16 if bf16_intermediates else jnp.float32
    quant = ((lambda t: t.astype(jnp.bfloat16).astype(jnp.float32))
             if bf16_intermediates else (lambda t: t))

    def bn(t, g, b):
        m = jnp.mean(t, axis=(0, 2, 3), keepdims=True)
        v = jnp.mean(jnp.square(t - m), axis=(0, 2, 3), keepdims=True)
        return (g.reshape(1, -1, 1, 1) * (t - m) * lax.rsqrt(v + EPS)
                + b.reshape(1, -1, 1, 1))

    def conv(t, w_oihw, bias, pad):
        y = lax.conv_general_dilated(
            t.astype(op_dt), w_oihw.astype(op_dt), (1, 1), pad,
            dimension_numbers=("NCHW", "OIHW", "NCHW"),
            preferred_element_type=jnp.float32,
            precision=None if bf16_intermediates else lax.Precision.HIGHEST)
        return y + bias.reshape(1, -1, 1, 1)

    h = jax.nn.relu(bn(x, params["g1"], params["b1"]))
    h = quant(conv(h, params["w1"].reshape(P, Cin, 1, 1), params["cb1"], ((0, 0), (0, 0))))
    h = jax.nn.relu(bn(h, params["g2"], params["b2"]))
    h = quant(conv(h, params["w2"], params["cb2"], ((1, 1), (1, 1))))
    h = jax.nn.relu(bn(h, params["g3"], params["b3"]))
    h = conv(h, params["w3"].reshape(Cout, P, 1, 1), params["cb3"], ((0, 0), (0, 0)))
    return h + x


# --------------------------------------------------------------------------
if __name__ == "__main__":
    key = jax.random.PRNGKey(0)
    planes = 4
    inplanes = planes * 4        # residual add (downsample=None) requires this
    N, H, W = 2, 16, 16

    ks = jax.random.split(key, 13)

    def nrm(k, shape, scale=0.2):
        return scale * jax.random.normal(k, shape, jnp.float32)

    params = {
        "g1": 1.0 + nrm(ks[0], (inplanes,), 0.1),
        "b1": nrm(ks[1], (inplanes,), 0.05),
        "w1": nrm(ks[2], (planes, inplanes)),           # conv1 1x1, (O, I)
        "cb1": nrm(ks[3], (planes,), 0.05),
        "g2": 1.0 + nrm(ks[4], (planes,), 0.1),
        "b2": nrm(ks[5], (planes,), 0.05),
        "w2": nrm(ks[6], (planes, planes, 3, 3)),       # conv2 3x3, OIHW
        "cb2": nrm(ks[7], (planes,), 0.05),
        "g3": 1.0 + nrm(ks[8], (planes,), 0.1),
        "b3": nrm(ks[9], (planes,), 0.05),
        "w3": nrm(ks[10], (planes * 4, planes)),        # conv3 1x1, (O, I)
        "cb3": nrm(ks[11], (planes * 4,), 0.05),
    }
    x_nchw = jax.random.normal(ks[12], (N, inplanes, H, W), jnp.float32)

    out = jax.block_until_ready(bottleneck_forward(x_nchw, params))

    # 1) structural check vs. a reference that mirrors the kernel's bf16 cast
    #    points: remaining differences are f32 summation order + occasional
    #    one-ulp bf16 rounding flips (expected agreement ~1e-3).
    ref_b = ref_forward(x_nchw, params, bf16_intermediates=True)
    np.testing.assert_allclose(np.asarray(out), np.asarray(ref_b), rtol=1e-2, atol=1e-2)

    # 2) semantic check vs. the plain f32 module: bf16 has an 8-bit mantissa
    #    (<=0.4% per rounding); three quantized stages + bf16 matmul operands at
    #    these activation magnitudes bound the deviation well inside 5e-2.
    ref_f = ref_forward(x_nchw, params, bf16_intermediates=False)
    np.testing.assert_allclose(np.asarray(out), np.asarray(ref_f), rtol=5e-2, atol=5e-2)

    print("KERNEL_OK")
</pallas_src>

<mosaic_0001>
module attributes {stable_mosaic.version = 11 : i64} {
  func.func @_bn_relu_conv1x1_kernel(%arg0: i32, %arg1: i32, %arg2: memref<1x16x128xf32, #tpu.memory_space<vmem>>, %arg3: memref<16x1xf32, #tpu.memory_space<vmem>>, %arg4: memref<16x1xf32, #tpu.memory_space<vmem>>, %arg5: memref<4x16xbf16, #tpu.memory_space<vmem>>, %arg6: memref<4x1xf32, #tpu.memory_space<vmem>>, %arg7: memref<1x4x128xbf16, #tpu.memory_space<vmem>>, %arg8: memref<1x1x4x2xf32, #tpu.memory_space<vmem>>) attributes {dimension_semantics = [#tpu.dimension_semantics<parallel>, #tpu.dimension_semantics<parallel>], iteration_bounds = array<i64: 2, 2>, scalar_prefetch = 0 : i64, scratch_operands = 0 : i64, tpu.core_type = #tpu.core_type<tc>, window_params = [{transform_indices = @transform_0, window_bounds = array<i64: 1, 16, 128>}, {pipeline_mode = #tpu.pipeline_mode<synchronous>, transform_indices = @transform_1, window_bounds = array<i64: 16, 1>}, {pipeline_mode = #tpu.pipeline_mode<synchronous>, transform_indices = @transform_2, window_bounds = array<i64: 16, 1>}, {pipeline_mode = #tpu.pipeline_mode<synchronous>, transform_indices = @transform_3, window_bounds = array<i64: 4, 16>}, {pipeline_mode = #tpu.pipeline_mode<synchronous>, transform_indices = @transform_4, window_bounds = array<i64: 4, 1>}, {transform_indices = @transform_5, window_bounds = array<i64: 1, 4, 128>}, {transform_indices = @transform_6, window_bounds = array<i64: 1, 1, 4, 2>}]} {
    %c0 = arith.constant 0 : index
    %c0_0 = arith.constant 0 : index
    %c0_1 = arith.constant 0 : index
    %0 = vector.load %arg2[%c0, %c0_0, %c0_1] : memref<1x16x128xf32, #tpu.memory_space<vmem>>, vector<1x16x128xf32>
    %1 = vector.shape_cast %0 : vector<1x16x128xf32> to vector<16x128xf32>
    %c0_2 = arith.constant 0 : index
    %c0_3 = arith.constant 0 : index
    %2 = vector.load %arg3[%c0_2, %c0_3] : memref<16x1xf32, #tpu.memory_space<vmem>>, vector<16x1xf32>
    %3 = vector.broadcast %2 : vector<16x1xf32> to vector<16x128xf32>
    %4 = arith.mulf %1, %3 : vector<16x128xf32>
    %c0_4 = arith.constant 0 : index
    %c0_5 = arith.constant 0 : index
    %5 = vector.load %arg4[%c0_4, %c0_5] : memref<16x1xf32, #tpu.memory_space<vmem>>, vector<16x1xf32>
    %6 = vector.broadcast %5 : vector<16x1xf32> to vector<16x128xf32>
    %7 = arith.addf %4, %6 : vector<16x128xf32>
    %cst = arith.constant 0.000000e+00 : f32
    %8 = vector.broadcast %cst : f32 to vector<16x128xf32>
    %9 = arith.maximumf %7, %8 : vector<16x128xf32>
    %c0_6 = arith.constant 0 : index
    %c0_7 = arith.constant 0 : index
    %10 = vector.load %arg5[%c0_6, %c0_7] : memref<4x16xbf16, #tpu.memory_space<vmem>>, vector<4x16xbf16>
    %11 = arith.truncf %9 : vector<16x128xf32> to vector<16x128xbf16>
    %cst_8 = arith.constant dense<0.000000e+00> : vector<4x128xf32>
    %12 = tpu.matmul %10, %11, %cst_8 {dimension_numbers = #tpu.dot_dimension_numbers<[1], [0], [0], [1], [0, 0, 1, 1], [], []>} : vector<4x16xbf16>, vector<16x128xbf16>, vector<4x128xf32> -> vector<4x128xf32>
    %c0_9 = arith.constant 0 : index
    %c0_10 = arith.constant 0 : index
    %13 = vector.load %arg6[%c0_9, %c0_10] : memref<4x1xf32, #tpu.memory_space<vmem>>, vector<4x1xf32>
    %14 = vector.broadcast %13 : vector<4x1xf32> to vector<4x128xf32>
    %15 = arith.addf %12, %14 : vector<4x128xf32>
    %16 = arith.truncf %15 : vector<4x128xf32> to vector<4x128xbf16>
    %c0_11 = arith.constant 0 : index
    %c0_12 = arith.constant 0 : index
    %c0_13 = arith.constant 0 : index
    %17 = vector.load %arg7[%c0_11, %c0_12, %c0_13] : memref<1x4x128xbf16, #tpu.memory_space<vmem>>, vector<1x4x128xbf16>
    %18 = vector.shape_cast %17 : vector<1x4x128xbf16> to vector<4x128xbf16>
    %19 = vector.shape_cast %16 : vector<4x128xbf16> to vector<1x4x128xbf16>
    tpu.vector_store %arg7[%c0_11, %c0_12, %c0_13], %19 {strides = array<i32>} : memref<1x4x128xbf16, #tpu.memory_space<vmem>>, vector<1x4x128xbf16>,
    %20 = arith.extf %16 : vector<4x128xbf16> to vector<4x128xf32>
    %cst_14 = arith.constant dense<0.000000e+00> : vector<4xf32>
    %21 = vector.multi_reduction <add>, %20, %cst_14 [1] : vector<4x128xf32> to vector<4xf32>
    %22 = vector.shape_cast %21 : vector<4xf32> to vector<4x1xf32>
    %c0_15 = arith.constant 0 : index
    %c0_16 = arith.constant 0 : index
    %c0_17 = arith.constant 0 : index
    %c0_18 = arith.constant 0 : index
    %23 = vector.load %arg8[%c0_15, %c0_16, %c0_17, %c0_18] : memref<1x1x4x2xf32, #tpu.memory_space<vmem>>, vector<1x1x4x1xf32>
    %24 = vector.shape_cast %23 : vector<1x1x4x1xf32> to vector<4x1xf32>
    %25 = vector.shape_cast %22 : vector<4x1xf32> to vector<1x1x4x1xf32>
    tpu.vector_store %arg8[%c0_15, %c0_16, %c0_17, %c0_18], %25 {strides = array<i32>} : memref<1x1x4x2xf32, #tpu.memory_space<vmem>>, vector<1x1x4x1xf32>,
    %26 = arith.mulf %20, %20 : vector<4x128xf32>
    %cst_19 = arith.constant dense<0.000000e+00> : vector<4xf32>
    %27 = vector.multi_reduction <add>, %26, %cst_19 [1] : vector<4x128xf32> to vector<4xf32>
    %28 = vector.shape_cast %27 : vector<4xf32> to vector<4x1xf32>
    %c0_20 = arith.constant 0 : index
    %c0_21 = arith.constant 0 : index
    %c0_22 = arith.constant 0 : index
    %c1 = arith.constant 1 : index
    %29 = vector.load %arg8[%c0_20, %c0_21, %c0_22, %c1] : memref<1x1x4x2xf32, #tpu.memory_space<vmem>>, vector<1x1x4x1xf32>
    %30 = vector.shape_cast %29 : vector<1x1x4x1xf32> to vector<4x1xf32>
    %31 = vector.shape_cast %28 : vector<4x1xf32> to vector<1x1x4x1xf32>
    tpu.vector_store %arg8[%c0_20, %c0_21, %c0_22, %c1], %31 {strides = array<i32>} : memref<1x1x4x2xf32, #tpu.memory_space<vmem>>, vector<1x1x4x1xf32>,
    return
  }
  func.func @transform_0(%arg0: i32, %arg1: i32) -> (i32, i32, i32) {
    %c0_i32 = arith.constant 0 : i32
    %c0_i32_0 = arith.constant 0 : i32
    return %arg0, %c0_i32, %arg1 : i32, i32, i32
  }
  func.func @transform_1(%arg0: i32, %arg1: i32) -> (i32, i32) {
    %c0_i32 = arith.constant 0 : i32
    %c0_i32_0 = arith.constant 0 : i32
    %c0_i32_1 = arith.constant 0 : i32
    return %c0_i32, %c0_i32_0 : i32, i32
  }
  func.func @transform_2(%arg0: i32, %arg1: i32) -> (i32, i32) {
    %c0_i32 = arith.constant 0 : i32
    %c0_i32_0 = arith.constant 0 : i32
    %c0_i32_1 = arith.constant 0 : i32
    return %c0_i32, %c0_i32_0 : i32, i32
  }
  func.func @transform_3(%arg0: i32, %arg1: i32) -> (i32, i32) {
    %c0_i32 = arith.constant 0 : i32
    %c0_i32_0 = arith.constant 0 : i32
    %c0_i32_1 = arith.constant 0 : i32
    return %c0_i32, %c0_i32_0 : i32, i32
  }
  func.func @transform_4(%arg0: i32, %arg1: i32) -> (i32, i32) {
    %c0_i32 = arith.constant 0 : i32
    %c0_i32_0 = arith.constant 0 : i32
    %c0_i32_1 = arith.constant 0 : i32
    return %c0_i32, %c0_i32_0 : i32, i32
  }
  func.func @transform_5(%arg0: i32, %arg1: i32) -> (i32, i32, i32) {
    %c0_i32 = arith.constant 0 : i32
    %c0_i32_0 = arith.constant 0 : i32
    return %arg0, %c0_i32, %arg1 : i32, i32, i32
  }
  func.func @transform_6(%arg0: i32, %arg1: i32) -> (i32, i32, i32, i32) {
    %c0_i32 = arith.constant 0 : i32
    %c0_i32_0 = arith.constant 0 : i32
    %c0_i32_1 = arith.constant 0 : i32
    return %arg0, %arg1, %c0_i32, %c0_i32_0 : i32, i32, i32, i32
  }
}

module attributes {stable_mosaic.version = 11 : i64} {
  func.func @kernel(%arg0: i32, %arg1: memref<1x4x256xbf16, #tpu.memory_space<vmem>>, %arg2: memref<9x1x256xf32, #tpu.memory_space<vmem>>, %arg3: memref<4x1xf32, #tpu.memory_space<vmem>>, %arg4: memref<4x1xf32, #tpu.memory_space<vmem>>, %arg5: memref<9x4x4xbf16, #tpu.memory_space<vmem>>, %arg6: memref<4x1xf32, #tpu.memory_space<vmem>>, %arg7: memref<1x4x256xbf16, #tpu.memory_space<vmem>>, %arg8: memref<1x4x2xf32, #tpu.memory_space<vmem>>) attributes {dimension_semantics = [#tpu.dimension_semantics<parallel>], iteration_bounds = array<i64: 2>, scalar_prefetch = 0 : i64, scratch_operands = 0 : i64, tpu.core_type = #tpu.core_type<tc>, window_params = [{transform_indices = @transform_0, window_bounds = array<i64: 1, 4, 256>}, {pipeline_mode = #tpu.pipeline_mode<synchronous>, transform_indices = @transform_1, window_bounds = array<i64: 9, 1, 256>}, {pipeline_mode = #tpu.pipeline_mode<synchronous>, transform_indices = @transform_2, window_bounds = array<i64: 4, 1>}, {pipeline_mode = #tpu.pipeline_mode<synchronous>, transform_indices = @transform_3, window_bounds = array<i64: 4, 1>}, {pipeline_mode = #tpu.pipeline_mode<synchronous>, transform_indices = @transform_4, window_bounds = array<i64: 9, 4, 4>}, {pipeline_mode = #tpu.pipeline_mode<synchronous>, transform_indices = @transform_5, window_bounds = array<i64: 4, 1>}, {transform_indices = @transform_6, window_bounds = array<i64: 1, 4, 256>}, {transform_indices = @transform_7, window_bounds = array<i64: 1, 4, 2>}]} {
    %c0 = arith.constant 0 : index
    %c0_0 = arith.constant 0 : index
    %c0_1 = arith.constant 0 : index
    %0 = vector.load %arg1[%c0, %c0_0, %c0_1] : memref<1x4x256xbf16, #tpu.memory_space<vmem>>, vector<1x4x256xbf16>
    %1 = vector.shape_cast %0 : vector<1x4x256xbf16> to vector<4x256xbf16>
    %2 = arith.extf %1 : vector<4x256xbf16> to vector<4x256xf32>
    %c0_2 = arith.constant 0 : index
    %c0_3 = arith.constant 0 : index
    %3 = vector.load %arg3[%c0_2, %c0_3] : memref<4x1xf32, #tpu.memory_space<vmem>>, vector<4x1xf32>
    %4 = vector.broadcast %3 : vector<4x1xf32> to vector<4x256xf32>
    %5 = arith.mulf %2, %4 : vector<4x256xf32>
    %c0_4 = arith.constant 0 : index
    %c0_5 = arith.constant 0 : index
    %6 = vector.load %arg4[%c0_4, %c0_5] : memref<4x1xf32, #tpu.memory_space<vmem>>, vector<4x1xf32>
    %7 = vector.broadcast %6 : vector<4x1xf32> to vector<4x256xf32>
    %8 = arith.addf %5, %7 : vector<4x256xf32>
    %cst = arith.constant 0.000000e+00 : f32
    %9 = vector.broadcast %cst : f32 to vector<4x256xf32>
    %10 = arith.maximumf %8, %9 : vector<4x256xf32>
    %cst_6 = arith.constant 0.000000e+00 : f32
    %11 = vector.broadcast %cst_6 : f32 to vector<4x256xf32>
    %c17_i32 = arith.constant 17 : i32
    %12 = tpu.dynamic_rotate %10 by %c17_i32 dim 1 : vector<4x256xf32>, i32 -> vector<4x256xf32>
    %c0_7 = arith.constant 0 : index
    %c0_8 = arith.constant 0 : index
    %c0_9 = arith.constant 0 : index
    %13 = vector.load %arg2[%c0_7, %c0_8, %c0_9] : memref<9x1x256xf32, #tpu.memory_space<vmem>>, vector<1x1x256xf32>
    %14 = vector.shape_cast %13 : vector<1x1x256xf32> to vector<1x256xf32>
    %15 = vector.broadcast %14 : vector<1x256xf32> to vector<4x256xf32>
    %16 = arith.mulf %12, %15 : vector<4x256xf32>
    %c0_10 = arith.constant 0 : index
    %c0_11 = arith.constant 0 : index
    %c0_12 = arith.constant 0 : index
    %17 = vector.load %arg5[%c0_10, %c0_11, %c0_12] : memref<9x4x4xbf16, #tpu.memory_space<vmem>>, vector<1x4x4xbf16>
    %18 = vector.shape_cast %17 : vector<1x4x4xbf16> to vector<4x4xbf16>
    %19 = arith.truncf %16 : vector<4x256xf32> to vector<4x256xbf16>
    %cst_13 = arith.constant dense<0.000000e+00> : vector<4x256xf32>
    %20 = tpu.matmul %18, %19, %cst_13 {dimension_numbers = #tpu.dot_dimension_numbers<[1], [0], [0], [1], [0, 0, 1, 1], [], []>} : vector<4x4xbf16>, vector<4x256xbf16>, vector<4x256xf32> -> vector<4x256xf32>
    %21 = arith.addf %11, %20 : vector<4x256xf32>
    %c16_i32 = arith.constant 16 : i32
    %22 = tpu.dynamic_rotate %10 by %c16_i32 dim 1 : vector<4x256xf32>, i32 -> vector<4x256xf32>
    %c1 = arith.constant 1 : index
    %c0_14 = arith.constant 0 : index
    %c0_15 = arith.constant 0 : index
    %23 = vector.load %arg2[%c1, %c0_14, %c0_15] : memref<9x1x256xf32, #tpu.memory_space<vmem>>, vector<1x1x256xf32>
    %24 = vector.shape_cast %23 : vector<1x1x256xf32> to vector<1x256xf32>
    %25 = vector.broadcast %24 : vector<1x256xf32> to vector<4x256xf32>
    %26 = arith.mulf %22, %25 : vector<4x256xf32>
    %c1_16 = arith.constant 1 : index
    %c0_17 = arith.constant 0 : index
    %c0_18 = arith.constant 0 : index
    %27 = vector.load %arg5[%c1_16, %c0_17, %c0_18] : memref<9x4x4xbf16, #tpu.memory_space<vmem>>, vector<1x4x4xbf16>
    %28 = vector.shape_cast %27 : vector<1x4x4xbf16> to vector<4x4xbf16>
    %29 = arith.truncf %26 : vector<4x256xf32> to vector<4x256xbf16>
    %cst_19 = arith.constant dense<0.000000e+00> : vector<4x256xf32>
    %30 = tpu.matmul %28, %29, %cst_19 {dimension_numbers = #tpu.dot_dimension_numbers<[1], [0], [0], [1], [0, 0, 1, 1], [], []>} : vector<4x4xbf16>, vector<4x256xbf16>, vector<4x256xf32> -> vector<4x256xf32>
    %31 = arith.addf %21, %30 : vector<4x256xf32>
    %c15_i32 = arith.constant 15 : i32
    %32 = tpu.dynamic_rotate %10 by %c15_i32 dim 1 : vector<4x256xf32>, i32 -> vector<4x256xf32>
    %c2 = arith.constant 2 : index
    %c0_20 = arith.constant 0 : index
    %c0_21 = arith.constant 0 : index
    %33 = vector.load %arg2[%c2, %c0_20, %c0_21] : memref<9x1x256xf32, #tpu.memory_space<vmem>>, vector<1x1x256xf32>
    %34 = vector.shape_cast %33 : vector<1x1x256xf32> to vector<1x256xf32>
    %35 = vector.broadcast %34 : vector<1x256xf32> to vector<4x256xf32>
    %36 = arith.mulf %32, %35 : vector<4x256xf32>
    %c2_22 = arith.constant 2 : index
    %c0_23 = arith.constant 0 : index
    %c0_24 = arith.constant 0 : index
    %37 = vector.load %arg5[%c2_22, %c0_23, %c0_24] : memref<9x4x4xbf16, #tpu.memory_space<vmem>>, vector<1x4x4xbf16>
    %38 = vector.shape_cast %37 : vector<1x4x4xbf16> to vector<4x4xbf16>
    %39 = arith.truncf %36 : vector<4x256xf32> to vector<4x256xbf16>
    %cst_25 = arith.constant dense<0.000000e+00> : vector<4x256xf32>
    %40 = tpu.matmul %38, %39, %cst_25 {dimension_numbers = #tpu.dot_dimension_numbers<[1], [0], [0], [1], [0, 0, 1, 1], [], []>} : vector<4x4xbf16>, vector<4x256xbf16>, vector<4x256xf32> -> vector<4x256xf32>
    %41 = arith.addf %31, %40 : vector<4x256xf32>
    %c1_i32 = arith.constant 1 : i32
    %42 = tpu.dynamic_rotate %10 by %c1_i32 dim 1 : vector<4x256xf32>, i32 -> vector<4x256xf32>
    %c3 = arith.constant 3 : index
    %c0_26 = arith.constant 0 : index
    %c0_27 = arith.constant 0 : index
    %43 = vector.load %arg2[%c3, %c0_26, %c0_27] : memref<9x1x256xf32, #tpu.memory_space<vmem>>, vector<1x1x256xf32>
    %44 = vector.shape_cast %43 : vector<1x1x256xf32> to vector<1x256xf32>
    %45 = vector.broadcast %44 : vector<1x256xf32> to vector<4x256xf32>
    %46 = arith.mulf %42, %45 : vector<4x256xf32>
    %c3_28 = arith.constant 3 : index
    %c0_29 = arith.constant 0 : index
    %c0_30 = arith.constant 0 : index
    %47 = vector.load %arg5[%c3_28, %c0_29, %c0_30] : memref<9x4x4xbf16, #tpu.memory_space<vmem>>, vector<1x4x4xbf16>
    %48 = vector.shape_cast %47 : vector<1x4x4xbf16> to vector<4x4xbf16>
    %49 = arith.truncf %46 : vector<4x256xf32> to vector<4x256xbf16>
    %cst_31 = arith.constant dense<0.000000e+00> : vector<4x256xf32>
    %50 = tpu.matmul %48, %49, %cst_31 {dimension_numbers = #tpu.dot_dimension_numbers<[1], [0], [0], [1], [0, 0, 1, 1], [], []>} : vector<4x4xbf16>, vector<4x256xbf16>, vector<4x256xf32> -> vector<4x256xf32>
    %51 = arith.addf %41, %50 : vector<4x256xf32>
    %c4 = arith.constant 4 : index
    %c0_32 = arith.constant 0 : index
    %c0_33 = arith.constant 0 : index
    %52 = vector.load %arg5[%c4, %c0_32, %c0_33] : memref<9x4x4xbf16, #tpu.memory_space<vmem>>, vector<1x4x4xbf16>
    %53 = vector.shape_cast %52 : vector<1x4x4xbf16> to vector<4x4xbf16>
    %54 = arith.truncf %10 : vector<4x256xf32> to vector<4x256xbf16>
    %cst_34 = arith.constant dense<0.000000e+00> : vector<4x256xf32>
    %55 = tpu.matmul %53, %54, %cst_34 {dimension_numbers = #tpu.dot_dimension_numbers<[1], [0], [0], [1], [0, 0, 1, 1], [], []>} : vector<4x4xbf16>, vector<4x256xbf16>, vector<4x256xf32> -> vector<4x256xf32>
    %56 = arith.addf %51, %55 : vector<4x256xf32>
    %c255_i32 = arith.constant 255 : i32
    %57 = tpu.dynamic_rotate %10 by %c255_i32 dim 1 : vector<4x256xf32>, i32 -> vector<4x256xf32>
    %c5 = arith.constant 5 : index
    %c0_35 = arith.constant 0 : index
    %c0_36 = arith.constant 0 : index
    %58 = vector.load %arg2[%c5, %c0_35, %c0_36] : memref<9x1x256xf32, #tpu.memory_space<vmem>>, vector<1x1x256xf32>
    %59 = vector.shape_cast %58 : vector<1x1x256xf32> to vector<1x256xf32>
    %60 = vector.broadcast %59 : vector<1x256xf32> to vector<4x256xf32>
    %61 = arith.mulf %57, %60 : vector<4x256xf32>
    %c5_37 = arith.constant 5 : index
    %c0_38 = arith.constant 0 : index
    %c0_39 = arith.constant 0 : index
    %62 = vector.load %arg5[%c5_37, %c0_38, %c0_39] : memref<9x4x4xbf16, #tpu.memory_space<vmem>>, vector<1x4x4xbf16>
    %63 = vector.shape_cast %62 : vector<1x4x4xbf16> to vector<4x4xbf16>
    %64 = arith.truncf %61 : vector<4x256xf32> to vector<4x256xbf16>
    %cst_40 = arith.constant dense<0.000000e+00> : vector<4x256xf32>
    %65 = tpu.matmul %63, %64, %cst_40 {dimension_numbers = #tpu.dot_dimension_numbers<[1], [0], [0], [1], [0, 0, 1, 1], [], []>} : vector<4x4xbf16>, vector<4x256xbf16>, vector<4x256xf32> -> vector<4x256xf32>
    %66 = arith.addf %56, %65 : vector<4x256xf32>
    %c241_i32 = arith.constant 241 : i32
    %67 = tpu.dynamic_rotate %10 by %c241_i32 dim 1 : vector<4x256xf32>, i32 -> vector<4x256xf32>
    %c6 = arith.constant 6 : index
    %c0_41 = arith.constant 0 : index
    %c0_42 = arith.constant 0 : index
    %68 = vector.load %arg2[%c6, %c0_41, %c0_42] : memref<9x1x256xf32, #tpu.memory_space<vmem>>, vector<1x1x256xf32>
    %69 = vector.shape_cast %68 : vector<1x1x256xf32> to vector<1x256xf32>
    %70 = vector.broadcast %69 : vector<1x256xf32> to vector<4x256xf32>
    %71 = arith.mulf %67, %70 : vector<4x256xf32>
    %c6_43 = arith.constant 6 : index
    %c0_44 = arith.constant 0 : index
    %c0_45 = arith.constant 0 : index
    %72 = vector.load %arg5[%c6_43, %c0_44, %c0_45] : memref<9x4x4xbf16, #tpu.memory_space<vmem>>, vector<1x4x4xbf16>
    %73 = vector.shape_cast %72 : vector<1x4x4xbf16> to vector<4x4xbf16>
    %74 = arith.truncf %71 : vector<4x256xf32> to vector<4x256xbf16>
    %cst_46 = arith.constant dense<0.000000e+00> : vector<4x256xf32>
    %75 = tpu.matmul %73, %74, %cst_46 {dimension_numbers = #tpu.dot_dimension_numbers<[1], [0], [0], [1], [0, 0, 1, 1], [], []>} : vector<4x4xbf16>, vector<4x256xbf16>, vector<4x256xf32> -> vector<4x256xf32>
    %76 = arith.addf %66, %75 : vector<4x256xf32>
    %c240_i32 = arith.constant 240 : i32
    %77 = tpu.dynamic_rotate %10 by %c240_i32 dim 1 : vector<4x256xf32>, i32 -> vector<4x256xf32>
    %c7 = arith.constant 7 : index
    %c0_47 = arith.constant 0 : index
    %c0_48 = arith.constant 0 : index
    %78 = vector.load %arg2[%c7, %c0_47, %c0_48] : memref<9x1x256xf32, #tpu.memory_space<vmem>>, vector<1x1x256xf32>
    %79 = vector.shape_cast %78 : vector<1x1x256xf32> to vector<1x256xf32>
    %80 = vector.broadcast %79 : vector<1x256xf32> to vector<4x256xf32>
    %81 = arith.mulf %77, %80 : vector<4x256xf32>
    %c7_49 = arith.constant 7 : index
    %c0_50 = arith.constant 0 : index
    %c0_51 = arith.constant 0 : index
    %82 = vector.load %arg5[%c7_49, %c0_50, %c0_51] : memref<9x4x4xbf16, #tpu.memory_space<vmem>>, vector<1x4x4xbf16>
    %83 = vector.shape_cast %82 : vector<1x4x4xbf16> to vector<4x4xbf16>
    %84 = arith.truncf %81 : vector<4x256xf32> to vector<4x256xbf16>
    %cst_52 = arith.constant dense<0.000000e+00> : vector<4x256xf32>
    %85 = tpu.matmul %83, %84, %cst_52 {dimension_numbers = #tpu.dot_dimension_numbers<[1], [0], [0], [1], [0, 0, 1, 1], [], []>} : vector<4x4xbf16>, vector<4x256xbf16>, vector<4x256xf32> -> vector<4x256xf32>
    %86 = arith.addf %76, %85 : vector<4x256xf32>
    %c239_i32 = arith.constant 239 : i32
    %87 = tpu.dynamic_rotate %10 by %c239_i32 dim 1 : vector<4x256xf32>, i32 -> vector<4x256xf32>
    %c8 = arith.constant 8 : index
    %c0_53 = arith.constant 0 : index
    %c0_54 = arith.constant 0 : index
    %88 = vector.load %arg2[%c8, %c0_53, %c0_54] : memref<9x1x256xf32, #tpu.memory_space<vmem>>, vector<1x1x256xf32>
    %89 = vector.shape_cast %88 : vector<1x1x256xf32> to vector<1x256xf32>
    %90 = vector.broadcast %89 : vector<1x256xf32> to vector<4x256xf32>
    %91 = arith.mulf %87, %90 : vector<4x256xf32>
    %c8_55 = arith.constant 8 : index
    %c0_56 = arith.constant 0 : index
    %c0_57 = arith.constant 0 : index
    %92 = vector.load %arg5[%c8_55, %c0_56, %c0_57] : memref<9x4x4xbf16, #tpu.memory_space<vmem>>, vector<1x4x4xbf16>
    %93 = vector.shape_cast %92 : vector<1x4x4xbf16> to vector<4x4xbf16>
    %94 = arith.truncf %91 : vector<4x256xf32> to vector<4x256xbf16>
    %cst_58 = arith.constant dense<0.000000e+00> : vector<4x256xf32>
    %95 = tpu.matmul %93, %94, %cst_58 {dimension_numbers = #tpu.dot_dimension_numbers<[1], [0], [0], [1], [0, 0, 1, 1], [], []>} : vector<4x4xbf16>, vector<4x256xbf16>, vector<4x256xf32> -> vector<4x256xf32>
    %96 = arith.addf %86, %95 : vector<4x256xf32>
    %c0_59 = arith.constant 0 : index
    %c0_60 = arith.constant 0 : index
    %97 = vector.load %arg6[%c0_59, %c0_60] : memref<4x1xf32, #tpu.memory_space<vmem>>, vector<4x1xf32>
    %98 = vector.broadcast %97 : vector<4x1xf32> to vector<4x256xf32>
    %99 = arith.addf %96, %98 : vector<4x256xf32>
    %100 = arith.truncf %99 : vector<4x256xf32> to vector<4x256xbf16>
    %c0_61 = arith.constant 0 : index
    %c0_62 = arith.constant 0 : index
    %c0_63 = arith.constant 0 : index
    %101 = vector.load %arg7[%c0_61, %c0_62, %c0_63] : memref<1x4x256xbf16, #tpu.memory_space<vmem>>, vector<1x4x256xbf16>
    %102 = vector.shape_cast %101 : vector<1x4x256xbf16> to vector<4x256xbf16>
    %103 = vector.shape_cast %100 : vector<4x256xbf16> to vector<1x4x256xbf16>
    tpu.vector_store %arg7[%c0_61, %c0_62, %c0_63], %103 {strides = array<i32>} : memref<1x4x256xbf16, #tpu.memory_space<vmem>>, vector<1x4x256xbf16>,
    %104 = arith.extf %100 : vector<4x256xbf16> to vector<4x256xf32>
    %cst_64 = arith.constant dense<0.000000e+00> : vector<4xf32>
    %105 = vector.multi_reduction <add>, %104, %cst_64 [1] : vector<4x256xf32> to vector<4xf32>
    %106 = vector.shape_cast %105 : vector<4xf32> to vector<4x1xf32>
    %c0_65 = arith.constant 0 : index
    %c0_66 = arith.constant 0 : index
    %c0_67 = arith.constant 0 : index
    %107 = vector.load %arg8[%c0_65, %c0_66, %c0_67] : memref<1x4x2xf32, #tpu.memory_space<vmem>>, vector<1x4x1xf32>
    %108 = vector.shape_cast %107 : vector<1x4x1xf32> to vector<4x1xf32>
    %109 = vector.shape_cast %106 : vector<4x1xf32> to vector<1x4x1xf32>
    tpu.vector_store %arg8[%c0_65, %c0_66, %c0_67], %109 {strides = array<i32>} : memref<1x4x2xf32, #tpu.memory_space<vmem>>, vector<1x4x1xf32>,
    %110 = arith.mulf %104, %104 : vector<4x256xf32>
    %cst_68 = arith.constant dense<0.000000e+00> : vector<4xf32>
    %111 = vector.multi_reduction <add>, %110, %cst_68 [1] : vector<4x256xf32> to vector<4xf32>
    %112 = vector.shape_cast %111 : vector<4xf32> to vector<4x1xf32>
    %c0_69 = arith.constant 0 : index
    %c0_70 = arith.constant 0 : index
    %c1_71 = arith.constant 1 : index
    %113 = vector.load %arg8[%c0_69, %c0_70, %c1_71] : memref<1x4x2xf32, #tpu.memory_space<vmem>>, vector<1x4x1xf32>
    %114 = vector.shape_cast %113 : vector<1x4x1xf32> to vector<4x1xf32>
    %115 = vector.shape_cast %112 : vector<4x1xf32> to vector<1x4x1xf32>
    tpu.vector_store %arg8[%c0_69, %c0_70, %c1_71], %115 {strides = array<i32>} : memref<1x4x2xf32, #tpu.memory_space<vmem>>, vector<1x4x1xf32>,
    return
  }
  func.func @transform_0(%arg0: i32) -> (i32, i32, i32) {
    %c0_i32 = arith.constant 0 : i32
    %c0_i32_0 = arith.constant 0 : i32
    %c0_i32_1 = arith.constant 0 : i32
    return %arg0, %c0_i32, %c0_i32_0 : i32, i32, i32
  }
  func.func @transform_1(%arg0: i32) -> (i32, i32, i32) {
    %c0_i32 = arith.constant 0 : i32
    %c0_i32_0 = arith.constant 0 : i32
    %c0_i32_1 = arith.constant 0 : i32
    %c0_i32_2 = arith.constant 0 : i32
    return %c0_i32, %c0_i32_0, %c0_i32_1 : i32, i32, i32
  }
  func.func @transform_2(%arg0: i32) -> (i32, i32) {
    %c0_i32 = arith.constant 0 : i32
    %c0_i32_0 = arith.constant 0 : i32
    %c0_i32_1 = arith.constant 0 : i32
    return %c0_i32, %c0_i32_0 : i32, i32
  }
  func.func @transform_3(%arg0: i32) -> (i32, i32) {
    %c0_i32 = arith.constant 0 : i32
    %c0_i32_0 = arith.constant 0 : i32
    %c0_i32_1 = arith.constant 0 : i32
    return %c0_i32, %c0_i32_0 : i32, i32
  }
  func.func @transform_4(%arg0: i32) -> (i32, i32, i32) {
    %c0_i32 = arith.constant 0 : i32
    %c0_i32_0 = arith.constant 0 : i32
    %c0_i32_1 = arith.constant 0 : i32
    %c0_i32_2 = arith.constant 0 : i32
    return %c0_i32, %c0_i32_0, %c0_i32_1 : i32, i32, i32
  }
  func.func @transform_5(%arg0: i32) -> (i32, i32) {
    %c0_i32 = arith.constant 0 : i32
    %c0_i32_0 = arith.constant 0 : i32
    %c0_i32_1 = arith.constant 0 : i32
    return %c0_i32, %c0_i32_0 : i32, i32
  }
  func.func @transform_6(%arg0: i32) -> (i32, i32, i32) {
    %c0_i32 = arith.constant 0 : i32
    %c0_i32_0 = arith.constant 0 : i32
    %c0_i32_1 = arith.constant 0 : i32
    return %arg0, %c0_i32, %c0_i32_0 : i32, i32, i32
  }
  func.func @transform_7(%arg0: i32) -> (i32, i32, i32) {
    %c0_i32 = arith.constant 0 : i32
    %c0_i32_0 = arith.constant 0 : i32
    %c0_i32_1 = arith.constant 0 : i32
    return %arg0, %c0_i32, %c0_i32_0 : i32, i32, i32
  }
}

module attributes {stable_mosaic.version = 11 : i64} {
  func.func @_bn_relu_conv1x1_residual_kernel(%arg0: i32, %arg1: i32, %arg2: memref<1x4x128xbf16, #tpu.memory_space<vmem>>, %arg3: memref<1x16x128xf32, #tpu.memory_space<vmem>>, %arg4: memref<4x1xf32, #tpu.memory_space<vmem>>, %arg5: memref<4x1xf32, #tpu.memory_space<vmem>>, %arg6: memref<16x4xbf16, #tpu.memory_space<vmem>>, %arg7: memref<16x1xf32, #tpu.memory_space<vmem>>, %arg8: memref<1x16x128xf32, #tpu.memory_space<vmem>>) attributes {dimension_semantics = [#tpu.dimension_semantics<parallel>, #tpu.dimension_semantics<parallel>], iteration_bounds = array<i64: 2, 2>, scalar_prefetch = 0 : i64, scratch_operands = 0 : i64, tpu.core_type = #tpu.core_type<tc>, window_params = [{transform_indices = @transform_0, window_bounds = array<i64: 1, 4, 128>}, {transform_indices = @transform_1, window_bounds = array<i64: 1, 16, 128>}, {pipeline_mode = #tpu.pipeline_mode<synchronous>, transform_indices = @transform_2, window_bounds = array<i64: 4, 1>}, {pipeline_mode = #tpu.pipeline_mode<synchronous>, transform_indices = @transform_3, window_bounds = array<i64: 4, 1>}, {pipeline_mode = #tpu.pipeline_mode<synchronous>, transform_indices = @transform_4, window_bounds = array<i64: 16, 4>}, {pipeline_mode = #tpu.pipeline_mode<synchronous>, transform_indices = @transform_5, window_bounds = array<i64: 16, 1>}, {transform_indices = @transform_6, window_bounds = array<i64: 1, 16, 128>}]} {
    %c0 = arith.constant 0 : index
    %c0_0 = arith.constant 0 : index
    %c0_1 = arith.constant 0 : index
    %0 = vector.load %arg2[%c0, %c0_0, %c0_1] : memref<1x4x128xbf16, #tpu.memory_space<vmem>>, vector<1x4x128xbf16>
    %1 = vector.shape_cast %0 : vector<1x4x128xbf16> to vector<4x128xbf16>
    %2 = arith.extf %1 : vector<4x128xbf16> to vector<4x128xf32>
    %c0_2 = arith.constant 0 : index
    %c0_3 = arith.constant 0 : index
    %3 = vector.load %arg4[%c0_2, %c0_3] : memref<4x1xf32, #tpu.memory_space<vmem>>, vector<4x1xf32>
    %4 = vector.broadcast %3 : vector<4x1xf32> to vector<4x128xf32>
    %5 = arith.mulf %2, %4 : vector<4x128xf32>
    %c0_4 = arith.constant 0 : index
    %c0_5 = arith.constant 0 : index
    %6 = vector.load %arg5[%c0_4, %c0_5] : memref<4x1xf32, #tpu.memory_space<vmem>>, vector<4x1xf32>
    %7 = vector.broadcast %6 : vector<4x1xf32> to vector<4x128xf32>
    %8 = arith.addf %5, %7 : vector<4x128xf32>
    %cst = arith.constant 0.000000e+00 : f32
    %9 = vector.broadcast %cst : f32 to vector<4x128xf32>
    %10 = arith.maximumf %8, %9 : vector<4x128xf32>
    %c0_6 = arith.constant 0 : index
    %c0_7 = arith.constant 0 : index
    %11 = vector.load %arg6[%c0_6, %c0_7] : memref<16x4xbf16, #tpu.memory_space<vmem>>, vector<16x4xbf16>
    %12 = arith.truncf %10 : vector<4x128xf32> to vector<4x128xbf16>
    %cst_8 = arith.constant dense<0.000000e+00> : vector<16x128xf32>
    %13 = tpu.matmul %11, %12, %cst_8 {dimension_numbers = #tpu.dot_dimension_numbers<[1], [0], [0], [1], [0, 0, 1, 1], [], []>} : vector<16x4xbf16>, vector<4x128xbf16>, vector<16x128xf32> -> vector<16x128xf32>
    %c0_9 = arith.constant 0 : index
    %c0_10 = arith.constant 0 : index
    %14 = vector.load %arg7[%c0_9, %c0_10] : memref<16x1xf32, #tpu.memory_space<vmem>>, vector<16x1xf32>
    %15 = vector.broadcast %14 : vector<16x1xf32> to vector<16x128xf32>
    %16 = arith.addf %13, %15 : vector<16x128xf32>
    %c0_11 = arith.constant 0 : index
    %c0_12 = arith.constant 0 : index
    %c0_13 = arith.constant 0 : index
    %17 = vector.load %arg3[%c0_11, %c0_12, %c0_13] : memref<1x16x128xf32, #tpu.memory_space<vmem>>, vector<1x16x128xf32>
    %18 = vector.shape_cast %17 : vector<1x16x128xf32> to vector<16x128xf32>
    %19 = arith.addf %16, %18 : vector<16x128xf32>
    %c0_14 = arith.constant 0 : index
    %c0_15 = arith.constant 0 : index
    %c0_16 = arith.constant 0 : index
    %20 = vector.load %arg8[%c0_14, %c0_15, %c0_16] : memref<1x16x128xf32, #tpu.memory_space<vmem>>, vector<1x16x128xf32>
    %21 = vector.shape_cast %20 : vector<1x16x128xf32> to vector<16x128xf32>
    %22 = vector.shape_cast %19 : vector<16x128xf32> to vector<1x16x128xf32>
    tpu.vector_store %arg8[%c0_14, %c0_15, %c0_16], %22 {strides = array<i32>} : memref<1x16x128xf32, #tpu.memory_space<vmem>>, vector<1x16x128xf32>,
    return
  }
  func.func @transform_0(%arg0: i32, %arg1: i32) -> (i32, i32, i32) {
    %c0_i32 = arith.constant 0 : i32
    %c0_i32_0 = arith.constant 0 : i32
    return %arg0, %c0_i32, %arg1 : i32, i32, i32
  }
  func.func @transform_1(%arg0: i32, %arg1: i32) -> (i32, i32, i32) {
    %c0_i32 = arith.constant 0 : i32
    %c0_i32_0 = arith.constant 0 : i32
    return %arg0, %c0_i32, %arg1 : i32, i32, i32
  }
  func.func @transform_2(%arg0: i32, %arg1: i32) -> (i32, i32) {
    %c0_i32 = arith.constant 0 : i32
    %c0_i32_0 = arith.constant 0 : i32
    %c0_i32_1 = arith.constant 0 : i32
    return %c0_i32, %c0_i32_0 : i32, i32
  }
  func.func @transform_3(%arg0: i32, %arg1: i32) -> (i32, i32) {
    %c0_i32 = arith.constant 0 : i32
    %c0_i32_0 = arith.constant 0 : i32
    %c0_i32_1 = arith.constant 0 : i32
    return %c0_i32, %c0_i32_0 : i32, i32
  }
  func.func @transform_4(%arg0: i32, %arg1: i32) -> (i32, i32) {
    %c0_i32 = arith.constant 0 : i32
    %c0_i32_0 = arith.constant 0 : i32
    %c0_i32_1 = arith.constant 0 : i32
    return %c0_i32, %c0_i32_0 : i32, i32
  }
  func.func @transform_5(%arg0: i32, %arg1: i32) -> (i32, i32) {
    %c0_i32 = arith.constant 0 : i32
    %c0_i32_0 = arith.constant 0 : i32
    %c0_i32_1 = arith.constant 0 : i32
    return %c0_i32, %c0_i32_0 : i32, i32
  }
  func.func @transform_6(%arg0: i32, %arg1: i32) -> (i32, i32, i32) {
    %c0_i32 = arith.constant 0 : i32
    %c0_i32_0 = arith.constant 0 : i32
    return %arg0, %c0_i32, %arg1 : i32, i32, i32
  }
}

</mosaic_0001>

<bundles_post_ra>
// kernel: bottleneck_forward.3
= control target key start
LH: loop header
LB: loop body
LE: loop exit
PB: predicated region body
PF: predicated region fallthrough
CT: control target
= control target key end

     0   :  { %s749_s21 = smov 0   ;;  %s751_s22 = smov 0   ;;  %s861_s0 = inlined_call_operand.vmem [shape: f32[2,16,256], index: 0, kind: input, shape index: {}]   ;;  %s862_s1 = inlined_call_operand.vmem [shape: f32[16,1], index: 1, kind: input, shape index: {}]   ;;  %s863_s2 = inlined_call_operand.vmem [shape: f32[16,1], index: 2, kind: input, shape index: {}]   ;;  %s864_s3 = inlined_call_operand.vmem [shape: bf16[4,16], index: 3, kind: input, shape index: {}]   ;;  %s865_s4 = inlined_call_operand.vmem [shape: f32[4,1], index: 4, kind: input, shape index: {}]   ;;  %s866_s5 = inlined_call_operand.vmem [shape: bf16[2,4,256], index: 5, kind: output, shape index: {0}]   ;;  %s867_s6 = inlined_call_operand.vmem [shape: f32[2,2,4,2], index: 6, kind: output, shape index: {1}]  }
   0x1   :  { %s753_s23 = smov 0   ;;  %s755_s24 = smov 0  }
   0x2   :  { %s757_s25 = smov 0   ;;  %s759_s26 = smov 0  }
   0x3   :  { %s761_s27 = smov 0  }
   0x4 LB: > { %s26_s28 = sadd.s32 1, %s701_s25  ;;  %s29_s29 = sadd.s32 1, %s705_s26  ;;  %s709_s27 = sphi %s761_s27, %s17_s27   ;;  %s705_s26 = sphi %s759_s26, %s873_s26   ;;  %s701_s25 = sphi %s757_s25, %s872_s25   ;;  %s697_s24 = sphi %s755_s24, %s871_s24   ;;  %s693_s23 = sphi %s753_s23, %s870_s23   ;;  %s689_s22 = sphi %s751_s22, %s869_s22   ;;  %s685_s21 = sphi %s749_s21, %s868_s21  }
   0x5   : > { %p27_p0 = scmp.ge.s32.totalorder %s26_s28, 2  ;;  %p45_p1 = scmp.ne.s32.totalorder %s689_s22, %s685_s21 }
   0x6   : > { %p46_p2 = scmp.eq.s32.totalorder %s709_s27, 0  ;;  %s38_s9 = sadd.s32 1, %s689_s22 }
   0x7   : > { %s875_s28 = smov (%p27_p0, %s26_s28), 0  ;;  %s877_s29 = smov (!%p27_p0, %s29_s29), %s705_s26 }
   0x8   : > { %p47_p3 = por %p46_p2, %p45_p1  ;;  %p31_p4 = scmp.ge.s32.totalorder %s877_s29, 2 }
   0x9   : > { %s34_s30 = ssub.s32 %s701_s25, %s875_s28  ;;  %p573_p6 = scmp.ge.s32.totalorder %s709_s27, 4 }
   0xa   : > { %s879_s29 = smov (%p31_p4, %s877_s29), 0 }
   0xb   : > { %s33_s7 = ssub.s32 %s705_s26, %s879_s29  ;;  %223 = sbr.rel (%p573_p6) target bundleno = 25 (0x19), region = 32 }
   0xc   : > { %s35_s8 = sor.u32 %s34_s30, %s33_s7 }
   0xd   : > { %p36_p5 = scmp.eq.s32.totalorder %s35_s8, 0 }
   0xf   : > { %s800_s10 = scalar_select %p36_p5, %s689_s22, %s38_s9  }
  0x12   : > { %226 = sbr.rel (!%p47_p3) target bundleno = 25 (0x19), region = 36  ;;  %s228_s11 = sand.u32 (%p47_p3), 1, %s689_s22  }
  0x13   : > { %s575_s12 = sshll.u32 (%p47_p3), %s705_s26, 2  ;;  %s574_s13 = sshll.u32 (%p47_p3), %s228_s11, 4 }
  0x14   : > { %s232_s14 = sadd.s32 (%p47_p3), %s701_s25, %s575_s12  ;;  %s230_s19 = scalar_lea.vmem (%p47_p3), [#allocation2], %s574_s13 }
  0x15   : > { %s576_s15 = sshll.u32 (%p47_p3), %s232_s14, 3 }
  0x16   : > { %s234_s18 = scalar_lea.vmem (%p47_p3), %s861_s0, %s576_s15 }
  0x17   : > { %v264_v0 = vld [vmem:[%s234_s18] sm:$0xff] (%p47_p3)  ;;  %v266_v1 = vld [vmem:[%s234_s18 + $0x10] sm:$0xff] (%p47_p3) }
  0x18   : > { %265 = vst [vmem:[%s230_s19] sm:$0xff] (%p47_p3), %v264_v0  ;;  %267 = vst [vmem:[%s230_s19 + $0x8] sm:$0xff] (%p47_p3), %v266_v1 }
  0x19 PF: > { %p577_p7 = scmp.ge.s32.totalorder %s709_s27, 1  ;;  %p272_p8 = scmp.lt.s32.totalorder %s709_s27, 5 }
  0x1b   : > { %p273_p9 = pnand %p577_p7, %p272_p8 }
  0x1c   : > { %v352_v2 = vld [vmem:[%s863_s2] sm:$0xff] (!%p273_p9)  ;;  %v711_v4 = vmov (!%p273_p9), 0   ;;  %v353_v5 = vld [vmem:[%s863_s2 + $0x8] sm:$0xff] (!%p273_p9)  ;;  %v712_v8 = vmov (!%p273_p9), 0.0   ;;  %vm713_vm0 = vmmov (!%p273_p9), 0   ;;  %s279_s16 = sand.u32 (!%p273_p9), 1, %s685_s21  }
  0x1d   : > { %276 = sbr.rel (%p273_p9) target bundleno = 537 (0x219), region = 74  ;;  %v338_v3 = vld [vmem:[%s862_s1] sm:$0xff] (!%p273_p9)  ;;  %654 = vset.pattern.permute.xlu1 (!%p273_p9), %v711_v4  ;;  %653 = vset.pattern.permute.xlu0 (!%p273_p9), %v711_v4  ;;  %v339_v6 = vld [vmem:[%s862_s1 + $0x8] sm:$0xff] (!%p273_p9)  ;;  %s578_s17 = sshll.u32 (!%p273_p9), %s279_s16, 4  ;;  %vm376_vm1 = vcmask (!%p273_p9), 130048   ;;  %vm423_vm2 = vcmask (!%p273_p9), 1043456  }
  0x1e   : > { %356 = vperm.xlu1 (!%p273_p9), %654, %v352_v2   ;;  %342 = vperm.xlu0 (!%p273_p9), %653, %v338_v3   ;;  %v370_v7 = vld [vmem:[%s865_s4] sm:$0xf] (!%p273_p9)  ;;  %s281_s18 = scalar_lea.vmem (!%p273_p9), [#allocation2], %s578_s17  ;;  %p319_p10 = scmp.lt.s32.totalorder (!%p273_p9), %s697_s24, 1  ;;  %vm427_vm3 = vcmask (!%p273_p9), 3072   ;;  %vm433_vm4 = vcmask (!%p273_p9), 11272  }
  0x1f   : > { %588 = vmatprep.subr.bf16.mxu0 (!%p273_p9), %v712_v8  ;;  %590 = vmatprep.mubr.msk.bf16.mxu0 (!%p273_p9), %vm713_vm0, %v712_v8  ;;  %v336_v9 = vld [vmem:[%s281_s18] sm:$0xff] (!%p273_p9)  ;;  %v337_v13 = vld [vmem:[%s281_s18 + $0x8] sm:$0xff] (!%p273_p9)  ;;  %p321_p11 = scmp.lt.s32.totalorder (!%p273_p9), %s693_s23, 1 }
  0x20   : > { %v368_v22 = vld [vmem:[%s864_s3] sm:$0x3] (!%p273_p9) }
  0x22   : > { %361 = vperm.xlu1 (!%p273_p9), %654, %v353_v5   ;;  %347 = vperm.xlu0 (!%p273_p9), %653, %v339_v6  }
  0x24   : > { %s881_s24 = smov (!%p319_p10, %s697_s24), 1  ;;  %s883_s23 = smov (!%p321_p11, %s693_s23), 1 }
  0x25   : > { %s579_s20 = sshll.u32 %s881_s24, 1 }
  0x26   : > { %373 = vperm.xlu0 %653, %v370_v7   ;;  %s324_s30 = sadd.s32 %s579_s20, %s883_s23 }
  0x27   : > { %s580_s7 = sshll.u32 %s324_s30, 1  ;;  %s582_s23 = sshll.u32 %s324_s30, 2 }
  0x28   : > { %s326_s11 = scalar_lea.vmem %s866_s5, %s580_s7  ;;  %s334_s13 = scalar_lea.vmem %s867_s6, %s582_s23 }
  0x9d   : > { %v357_v10 = vpop.permute.xlu1 %356  ;;  %v343_v11 = vpop.permute.xlu0 %342 }
  0x9e   : > { %v350_v12 = vmul.f32 %v343_v11, %v336_v9 }
  0xa0   : > { %v364_v15 = vadd.f32 %v357_v10, %v350_v12 }
  0xa1   : > { %v348_v14 = vpop.permute.xlu0 %347  ;;  %v362_v17 = vpop.permute.xlu1 %361 }
  0xa2   : > { %v351_v16 = vmul.f32 %v348_v14, %v337_v13  ;;  %v366_v19 = vmax.f32 %v364_v15, 0.0 }
  0xa4   : > { %v365_v18 = vadd.f32 %v362_v17, %v351_v16 }
  0xa5   : > { %v374_v23 = vpop.permute.xlu0 %373 }
  0xa6   : > { %v367_v20 = vmax.f32 %v365_v18, 0.0 }
  0xa8   : > { %v369_v21 = vpack.c.bf16 %v367_v20, %v366_v19 }
  0xaa   : > { %589 = vmatpush3.bf16.msra.mxu0 %v369_v21 }
  0xad   : > { %591 = vmatmul.mubr.msk.bf16.vlgmr.msra.gmra.mrb[0].mxu0 %vm376_vm1, %v368_v22 }
 0x180   : > { %v414_v24 = vpop.f32.mrb[0].mxu0 }
 0x181   : > { %v415_v25 = vadd.f32 %v414_v24, %v374_v23  ;;  %v592_v26 = vpop.f32.mrb[1].mxu0 }
 0x182   : > { %v417_v27 = vpop.f32.mrb[2].mxu0 }
 0x183   : > { %v420_v28 = vpack.c.bf16 %v415_v25, %v415_v25  ;;  %v593_v29 = vpop.f32.mrb[3].mxu0 }
 0x185   : > { %421 = vst [vmem:[%s326_s11] sm:$0x3] %v420_v28  ;;  %v422_v30 = vunpack.c.l.bf16 %v420_v28 }
 0x187   : > { %v424_v31 = vsel %vm423_vm2, %v422_v30, 0.0  ;;  %v429_v32 = vmul.f32 %v422_v30, %v422_v30 }
 0x188   : > { %425 = vadd.xlane.f32.xlu1 %v424_v31 }
 0x189   : > { %v430_v33 = vsel %vm423_vm2, %v429_v32, 0.0 }
 0x18a   : > { %431 = vadd.xlane.f32.xlu0 %v430_v33 }
 0x215   : > { %v426_v34 = vpop.xlane.xlu1 %425 }
 0x216   : > { %428 = vst.msk [vmem:[%s334_s13] sm:$0xf] %vm427_vm3, %v426_v34 }
 0x217   : > { %v432_v35 = vpop.xlane.xlu0 %431 }
 0x218   : > { %434 = vst.msk [vmem:[%s334_s13] sm:$0xf] %vm433_vm4, %v432_v35 }
 0x219 PF: > { %s17_s27 = sadd.s32 1, %s709_s27   ;;  %s868_s21 = smov %s689_s22 }
 0x21a   : > { %p14_p12 = scmp.ge.s32.totalorder %s17_s27, 6   ;;  %s869_s22 = smov %s800_s10 }
 0x21b   : > { %s870_s23 = smov %s701_s25  ;;  %s871_s24 = smov %s705_s26 }
 0x21c   : > { %s872_s25 = smov %s875_s28  ;;  %s873_s26 = smov %s879_s29 }
 0x21d   :  { %16 = sbr.rel (!%p14_p12) target bundleno = 4 (0x4), region = 125 }

// kernel: bottleneck_forward.5
= control target key start
LH: loop header
LB: loop body
LE: loop exit
PB: predicated region body
PF: predicated region fallthrough
CT: control target
= control target key end

     0   :  { %s746_s21 = smov 0   ;;  %s748_s22 = smov 0   ;;  %s864_s0 = inlined_call_operand.vmem [shape: bf16[2,4,256], index: 0, kind: input, shape index: {}]   ;;  %s865_s1 = inlined_call_operand.vmem [shape: f32[2,16,256], index: 1, kind: input, shape index: {}, may-alias: {1,6}]   ;;  %s866_s2 = inlined_call_operand.vmem [shape: f32[4,1], index: 2, kind: input, shape index: {}]   ;;  %s867_s3 = inlined_call_operand.vmem [shape: f32[4,1], index: 3, kind: input, shape index: {}]   ;;  %s868_s4 = inlined_call_operand.vmem [shape: bf16[16,4], index: 4, kind: input, shape index: {}]   ;;  %s869_s5 = inlined_call_operand.vmem [shape: f32[16,1], index: 5, kind: input, shape index: {}]   ;;  %s870_s6 = inlined_call_operand.vmem [shape: f32[2,16,256], index: 6, kind: output, shape index: {}, may-alias: {1,6}]  }
   0x1   :  { %s750_s23 = smov 0   ;;  %s752_s24 = smov 0  }
   0x2   :  { %s754_s25 = smov 0   ;;  %s756_s26 = smov 0  }
   0x3   :  { %s758_s27 = smov 0  }
   0x4 LB: > { %s25_s28 = sadd.s32 1, %s698_s25  ;;  %s28_s29 = sadd.s32 1, %s702_s26  ;;  %s706_s27 = sphi %s758_s27, %s16_s27   ;;  %s702_s26 = sphi %s756_s26, %s877_s26   ;;  %s698_s25 = sphi %s754_s25, %s876_s25   ;;  %s694_s24 = sphi %s752_s24, %s875_s24   ;;  %s690_s23 = sphi %s750_s23, %s874_s23   ;;  %s686_s22 = sphi %s748_s22, %s873_s22   ;;  %s682_s21 = sphi %s746_s21, %s872_s21  }
   0x5   : > { %p26_p0 = scmp.ge.s32.totalorder %s25_s28, 2  ;;  %s563_s30 = sadd.s32 4294967295, %s706_s27  }
   0x6   : > { %p72_p1 = scmp.ne.s32.totalorder %s686_s22, %s682_s21  ;;  %p73_p2 = scmp.eq.s32.totalorder %s706_s27, 0 }
   0x7   : > { %s879_s28 = smov (%p26_p0, %s25_s28), 0  ;;  %s881_s29 = smov (!%p26_p0, %s28_s29), %s702_s26 }
   0x8   : > { %p30_p3 = scmp.ge.s32.totalorder %s881_s29, 2  ;;  %p188_p4 = scmp.eq.s32.totalorder %s563_s30, 3 }
   0x9   : > { %s61_s7 = ssub.s32 %s698_s25, %s879_s28  ;;  %p74_p5 = por %p73_p2, %p72_p1 }
   0xa   : > { %s883_s29 = smov (%p30_p3, %s881_s29), 0  ;;  %p794_p6 = por %p188_p4, %p72_p1 }
   0xb   : > { %s60_s9 = ssub.s32 %s702_s26, %s883_s29  ;;  %s65_s11 = sadd.s32 1, %s686_s22 }
   0xc   : > { %s62_s10 = sor.u32 %s61_s7, %s60_s9  ;;  %p566_p8 = scmp.ge.s32.totalorder %s706_s27, 4 }
   0xd   : > { %p63_p7 = scmp.eq.s32.totalorder %s62_s10, 0 }
   0xe   : > { %222 = sbr.rel (%p566_p8) target bundleno = 28 (0x1c), region = 32 }
   0xf   : > { %s802_s12 = scalar_select %p63_p7, %s686_s22, %s65_s11  }
  0x15   : > { %236 = sbr.rel (!%p74_p5) target bundleno = 28 (0x1c), region = 40  ;;  %s238_s13 = sand.u32 (%p74_p5), 1, %s686_s22  }
  0x16   : > { %s568_s14 = sshll.u32 (%p74_p5), %s702_s26, 2  ;;  %s567_s15 = sshll.u32 (%p74_p5), %s238_s13, 4 }
  0x17   : > { %s242_s16 = sadd.s32 (%p74_p5), %s698_s25, %s568_s14  ;;  %s240_s30 = scalar_lea.vmem (%p74_p5), [#allocation2], %s567_s15 }
  0x18   : > { %s569_s17 = sshll.u32 (%p74_p5), %s242_s16, 3 }
  0x19   : > { %s244_s20 = scalar_lea.vmem (%p74_p5), %s865_s1, %s569_s17 }
  0x1a   : > { %v274_v0 = vld [vmem:[%s244_s20] sm:$0xff] (%p74_p5)  ;;  %v276_v1 = vld [vmem:[%s244_s20 + $0x10] sm:$0xff] (%p74_p5) }
  0x1b   : > { %275 = vst [vmem:[%s240_s30] sm:$0xff] (%p74_p5), %v274_v0  ;;  %277 = vst [vmem:[%s240_s30 + $0x8] sm:$0xff] (%p74_p5), %v276_v1 }
  0x1c PF: > { %p570_p9 = scmp.ge.s32.totalorder %s706_s27, 1  ;;  %p282_p10 = scmp.lt.s32.totalorder %s706_s27, 5 }
  0x1e   : > { %p283_p11 = pnand %p570_p9, %p282_p10 }
  0x1f   : > { %v336_v2 = vld [vmem:[%s866_s2] sm:$0xf] (!%p283_p11)  ;;  %v708_v3 = vmov (!%p283_p11), 0   ;;  %v709_v5 = vmov (!%p283_p11), 0.0   ;;  %vm710_vm0 = vmmov (!%p283_p11), 0   ;;  %v355_v7 = vld [vmem:[%s869_s5 + $0x8] sm:$0xff] (!%p283_p11) }
  0x20   : > { %286 = sbr.rel (%p283_p11) target bundleno = 402 (0x192), region = 78  ;;  %649 = vset.pattern.permute.xlu0 (!%p283_p11), %v708_v3  ;;  %650 = vset.pattern.permute.xlu1 (!%p283_p11), %v708_v3  ;;  %v343_v4 = vld [vmem:[%s867_s3] sm:$0xf] (!%p283_p11)  ;;  %p325_p12 = scmp.lt.s32.totalorder (!%p283_p11), %s694_s24, 1  ;;  %vm375_vm1 = vcmask (!%p283_p11), 1041408   ;;  %vm371_vm2 = vcmask (!%p283_p11), 31744  }
  0x21   : > { %339 = vperm.xlu0 (!%p283_p11), %649, %v336_v2   ;;  %584 = vmatprep.subr.bf16.mxu0 (!%p283_p11), %v709_v5  ;;  %v354_v6 = vld [vmem:[%s869_s5] sm:$0xff] (!%p283_p11)  ;;  %p327_p13 = scmp.lt.s32.totalorder (!%p283_p11), %s690_s23, 1  ;;  %s289_s14 = sand.u32 (!%p283_p11), 1, %s682_s21  }
  0x22   : > { %586 = vmatprep.mubr.msk.bf16.mxu0 (!%p283_p11), %vm710_vm0, %v709_v5  ;;  %358 = vperm.xlu1 (!%p283_p11), %650, %v354_v6   ;;  %v651_v17 = vld [vmem:[%s868_s4] sm:$0xff] (!%p283_p11)   ;;  %s571_s15 = sshll.u32 (!%p283_p11), %s289_s14, 4 }
  0x23   : > { %s291_s16 = scalar_lea.vmem (!%p283_p11), [#allocation2], %s571_s15 }
  0x24   : > { %v420_v20 = vld [vmem:[%s291_s16] sm:$0xff] (!%p283_p11)  ;;  %v421_v25 = vld [vmem:[%s291_s16 + $0x8] sm:$0xff] (!%p283_p11) }
  0x25   : > { %346 = vperm.xlu0 (!%p283_p11), %649, %v343_v4  }
  0x26   : > { %363 = vperm.xlu1 (!%p283_p11), %650, %v355_v7  }
  0x27   : > { %s326_s17 = scalar_select %p325_p12, %s694_s24, 1 }
  0x28   : > { %s328_s18 = scalar_select %p327_p13, %s690_s23, 1 }
  0x29   : > { %s573_s19 = sshll.u32 %s326_s17, 1  ;;  %s324_s17 = scalar_lea.vmem [#allocation3], %s571_s15 }
  0x2a   : > { %s330_s20 = sadd.s32 %s573_s19, %s328_s18  ;;  %s578_s21 = sshll.u32 (%p794_p6), %s694_s24, 2 }
  0x2b   : > { %s574_s30 = sshll.u32 %s330_s20, 1  ;;  %s434_s18 = sadd.s32 (%p794_p6), %s690_s23, %s578_s21 }
  0x2c   : > { %s332_s10 = scalar_lea.vmem %s864_s0, %s574_s30  ;;  %s579_s19 = sshll.u32 (%p794_p6), %s434_s18, 3 }
  0x2d   : > { %v334_v8 = vld [vmem:[%s332_s10] sm:$0x3]  ;;  %s436_s7 = scalar_lea.vmem (%p794_p6), %s870_s6, %s579_s19 }
  0x2e   : > { %v335_v9 = vunpack.c.l.bf16 %v334_v8 }
  0xa0   : > { %v340_v10 = vpop.permute.xlu0 %339 }
  0xa1   : > { %v342_v11 = vmul.f32 %v340_v10, %v335_v9  ;;  %v359_v18 = vpop.permute.xlu1 %358 }
  0xa4   : > { %v347_v12 = vpop.permute.xlu0 %346 }
  0xa5   : > { %v349_v13 = vadd.f32 %v347_v12, %v342_v11  ;;  %v364_v23 = vpop.permute.xlu1 %363 }
  0xa7   : > { %v350_v14 = vmax.f32 %v349_v13, 0.0 }
  0xa9   : > { %v353_v15 = vpack.c.bf16 %v350_v14, %v350_v14 }
  0xab   : > { %v377_v16 = vsel %vm375_vm1, %v353_v15, 0 }
  0xac   : > { %585 = vmatpush3.bf16.msra.mxu0 %v377_v16 }
  0xaf   : > { %587 = vmatmul.mubr.msk.bf16.vlgmr.msra.gmra.mrb[0].mxu0 %vm371_vm2, %v651_v17 }
 0x182   : > { %v413_v19 = vpop.f32.mrb[0].mxu0 }
 0x183   : > { %v414_v21 = vadd.f32 %v413_v19, %v359_v18  ;;  %v588_v22 = vpop.f32.mrb[1].mxu0  ;;  %432 = sbr.rel (!%p794_p6) target bundleno = 402 (0x192), region = 86 }
 0x184   : > { %v416_v24 = vpop.f32.mrb[2].mxu0 }
 0x185   : > { %v422_v26 = vadd.f32 %v420_v20, %v414_v21  ;;  %v417_v27 = vadd.f32 %v416_v24, %v364_v23  ;;  %v589_v28 = vpop.f32.mrb[3].mxu0 }
 0x187   : > { %424 = vst [vmem:[%s324_s17] sm:$0xff] %v422_v26  ;;  %v423_v29 = vadd.f32 %v421_v25, %v417_v27 }
 0x189   : > { %425 = vst [vmem:[%s324_s17 + $0x8] sm:$0xff] %v423_v29 }
 0x18e   : > { %v466_v30 = vld [vmem:[%s324_s17] sm:$0xff] }
 0x18f   : > { %467 = vst [vmem:[%s436_s7] sm:$0xff] %v466_v30 }
 0x190   : > { %v468_v31 = vld [vmem:[%s324_s17 + $0x8] sm:$0xff] }
 0x191   : > { %469 = vst [vmem:[%s436_s7 + $0x10] sm:$0xff] %v468_v31 }
 0x192 PF: > { %s16_s27 = sadd.s32 1, %s706_s27   ;;  %s872_s21 = smov %s686_s22 }
 0x193   : > { %p13_p0 = scmp.ge.s32.totalorder %s16_s27, 6   ;;  %s873_s22 = smov %s802_s12 }
 0x194   : > { %s874_s23 = smov %s698_s25  ;;  %s875_s24 = smov %s702_s26 }
 0x195   : > { %s876_s25 = smov %s879_s28  ;;  %s877_s26 = smov %s883_s29 }
 0x196   :  { %15 = sbr.rel (!%p13_p0) target bundleno = 4 (0x4), region = 158 }

// kernel: bottleneck_forward.4
= control target key start
LH: loop header
LB: loop body
LE: loop exit
PB: predicated region body
PF: predicated region fallthrough
CT: control target
= control target key end

     0   :  { %s1256_s24 = smov 0   ;;  %s1454_s0 = inlined_call_operand.vmem [shape: bf16[2,4,256], index: 0, kind: input, shape index: {}]   ;;  %s1455_s1 = inlined_call_operand.vmem [shape: f32[9,1,256], index: 1, kind: input, shape index: {}]   ;;  %s1456_s2 = inlined_call_operand.vmem [shape: f32[4,1], index: 2, kind: input, shape index: {}]   ;;  %s1457_s3 = inlined_call_operand.vmem [shape: f32[4,1], index: 3, kind: input, shape index: {}]   ;;  %s1458_s4 = inlined_call_operand.vmem [shape: bf16[9,4,4], index: 4, kind: input, shape index: {}]   ;;  %s1459_s5 = inlined_call_operand.vmem [shape: f32[4,1], index: 5, kind: input, shape index: {}]   ;;  %s1460_s6 = inlined_call_operand.vmem [shape: bf16[2,4,256], index: 6, kind: output, shape index: {0}]   ;;  %s1461_s7 = inlined_call_operand.vmem [shape: f32[2,4,2], index: 7, kind: output, shape index: {1}]  }
   0x1 LB: > { %s1130_s25 = sadd.s32 4294967295, %s1204_s24   ;;  %p1134_p0 = scmp.ge.s32.totalorder %s1204_s24, 1  ;;  %s1204_s24 = sphi %s1256_s24, %s18_s24  }
   0x2   : > { %p240_p1 = scmp.lt.s32.totalorder %s1204_s24, 3 }
   0x4   : > { %p241_p2 = pnand %p1134_p0, %p240_p1 }
   0x5   : > { %v293_v0 = vld [vmem:[%s1456_s2] sm:$0xf] (!%p241_p2)  ;;  %v1206_v1 = vmov (!%p241_p2), 0   ;;  %p276_p3 = scmp.lt.s32.totalorder (!%p241_p2), %s1130_s25, 1  ;;  %v1207_v3 = vmov (!%p241_p2), 839922192   ;;  %v301_v5 = vlaneseq (!%p241_p2) }
   0x6   : > { %244 = sbr.rel (%p241_p2) target bundleno = 674 (0x2a2), region = 44  ;;  %1197 = vset.pattern.permute.xlu0 (!%p241_p2), %v1206_v1  ;;  %420 = vmatprep.mubr.bf16.mxu0 (!%p241_p2), %v1206_v1  ;;  %v307_v2 = vld [vmem:[%s1457_s3] sm:$0xf] (!%p241_p2)  ;;  %v299_v4 = vunpack.c.l.s4 (!%p241_p2), %v1207_v3  ;;  %s1208_s11 = smov (!%p241_p2), 17   ;;  %v1146_v36 = vld [vmem:[%s1455_s1 + $0x4] sm:$0x3] (!%p241_p2) }
   0x7   : > { %296 = vperm.xlu0 (!%p241_p2), %1197, %v293_v0   ;;  %470 = vmatprep.mubr.bf16.mxu1 (!%p241_p2), %v1206_v1  ;;  %v302_v7 = vshrl.u32 (!%p241_p2), %v301_v5, 7  ;;  %s1209_s12 = smov (!%p241_p2), 16   ;;  %s1210_s13 = smov (!%p241_p2), 15   ;;  %v1003_v19 = vld [vmem:[%s1459_s5] sm:$0xf] (!%p241_p2)  ;;  %v1304_v20 = vand.u32 (!%p241_p2), 127, %v301_v5 }
   0x8   : > { %v300_v6 = vunpack.c.0.s8 (!%p241_p2), %v299_v4  ;;  %s1211_s14 = smov (!%p241_p2), 1   ;;  %s1212_s15 = smov (!%p241_p2), 127   ;;  %v1140_v23 = vld [vmem:[%s1455_s1 + $0x2] sm:$0x3] (!%p241_p2)  ;;  %v334_v28 = vld [vmem:[%s1455_s1] sm:$0x3] (!%p241_p2) }
   0x9   : > { %s1213_s16 = smov (!%p241_p2), 113   ;;  %s1214_s17 = smov (!%p241_p2), 112   ;;  %v1306_v21 = vsub.s32 (!%p241_p2), 0, %v302_v7  ;;  %v1308_v22 = vsub.s32 (!%p241_p2), 1, %v302_v7  ;;  %vm355_vm0 = vcmp.lt.s32.totalorder (!%p241_p2), %v1304_v20, 16  ;;  %vm331_vm1 = vcmp.lt.s32.totalorder (!%p241_p2), %v1304_v20, 17 }
   0xa   : > { %v303_v8 = vsub.s32 (!%p241_p2), %v300_v6, %v302_v7  ;;  %s1215_s18 = smov (!%p241_p2), 111   ;;  %vm381_vm2 = vcmask (!%p241_p2), 1041408   ;;  %vm483_vm3 = vcmp.lt.s32.totalorder (!%p241_p2), %v1304_v20, 15  ;;  %v1150_v49 = vld [vmem:[%s1455_s1 + $0x6] sm:$0x3] (!%p241_p2)  ;;  %vm377_vm4 = vcmask (!%p241_p2), 31744  }
   0xb   : > { %310 = vperm.xlu0 (!%p241_p2), %1197, %v307_v2   ;;  %v364_v26 = vrot.slane (!%p241_p2), %v1140_v23, %v1306_v21  ;;  %v368_v27 = vrot.slane (!%p241_p2), %v1140_v23, %v1308_v22  ;;  %v339_v34 = vrot.slane (!%p241_p2), %v334_v28, %v1306_v21  ;;  %v343_v37 = vrot.slane (!%p241_p2), %v334_v28, %v1308_v22  ;;  %v1141_v50 = vld [vmem:[%s1458_s4 + $0x2] sm:$0x3] (!%p241_p2)  ;;  %v1157_v62 = vld [vmem:[%s1455_s1 + $0xa] sm:$0x3] (!%p241_p2)  ;;  %v348_v63 = vld [vmem:[%s1458_s4] sm:$0x3] (!%p241_p2) }
   0xc   : > { %v492_v44 = vrot.slane (!%p241_p2), %v1146_v36, %v1306_v21  ;;  %v496_v47 = vrot.slane (!%p241_p2), %v1146_v36, %v1308_v22  ;;  %vm561_vm5 = vcmp.lt.s32.totalorder (!%p241_p2), %v1304_v20, 1  ;;  %v570_v56 = vrot.slane (!%p241_p2), %v1150_v49, %v1306_v21 }
   0xd   : > { %s1463_s25 = smov (!%p276_p3, %s1130_s25), 1  ;;  %v574_v61 = vrot.slane %v1150_v49, %v1308_v22  ;;  %vm695_vm6 = vcmp.lt.s32.totalorder %v1304_v20, 127  ;;  %vm773_vm7 = vcmp.lt.s32.totalorder %v1304_v20, 113  ;;  %vm851_vm8 = vcmp.lt.s32.totalorder %v1304_v20, 112 }
   0xe   : > { %s1273_s30 = sshll.u32 %s1463_s25, 2  ;;  %vm929_vm9 = vcmp.lt.s32.totalorder %v1304_v20, 111  ;;  %vm1027_vm10 = vcmask 1043456   ;;  %vm1033_vm11 = vcmask 3072   ;;  %vm1042_vm12 = vcmask 11272  }
   0xf   : > { %s280_s10 = scalar_lea.vmem %s1454_s0, %s1273_s30 }
  0x10   : > { %v291_v9 = vld [vmem:[%s280_s10] sm:$0xf] }
  0x11   : > { %v292_v11 = vunpack.c.l.bf16 %v291_v9 }
  0x86   : > { %v297_v10 = vpop.permute.xlu0 %296 }
  0x87   : > { %v304_v12 = vrot.slane %v297_v10, %v303_v8 }
  0x89   : > { %v306_v14 = vmul.f32 %v304_v12, %v292_v11  ;;  %v708_v12 = vrot.slane %v1157_v62, %v1308_v22 }
  0x8a   : > { %v311_v13 = vpop.permute.xlu0 %310 }
  0x8b   : > { %v318_v15 = vrot.slane %v311_v13, %v303_v8  ;;  %v704_v8 = vrot.slane %v1157_v62, %v1306_v21  ;;  %v1161_v13 = vld [vmem:[%s1455_s1 + $0xc] sm:$0x3] }
  0x8d   : > { %v320_v16 = vadd.f32 %v318_v15, %v306_v14  ;;  %v1147_v14 = vld [vmem:[%s1458_s4 + $0x4] sm:$0x3] }
  0x8f   : > { %v1279_v17 = vmax.f32 %v320_v16, 0.0 }
  0x91   : > { %325 = vrot.lane.b32.xlu0 %v1279_v17, %s1208_s11  ;;  %351 = vrot.lane.b32.xlu1 %v1279_v17, %s1209_s12  ;;  %v1285_v18 = vcombine.high %v1279_v17, %v1279_v17  ;;  %v637_v5 = vpack.c.bf16 %v1279_v17, %v1279_v17 }
  0x93   : > { %v638_v4 = vpack.c.bf16 %v1285_v18, %v1285_v18 }
  0x95   : > { %479 = vrot.lane.b32.xlu0 %v1279_v17, %s1210_s13  ;;  %353 = vrot.lane.b32.xlu1 %v1285_v18, %s1209_s12 }
  0x99   : > { %557 = vrot.lane.b32.xlu0 %v1279_v17, %s1211_s14  ;;  %327 = vrot.lane.b32.xlu1 %v1285_v18, %s1208_s11 }
  0x9d   : > { %691 = vrot.lane.b32.xlu0 %v1279_v17, %s1212_s15  ;;  %481 = vrot.lane.b32.xlu1 %v1285_v18, %s1210_s13 }
  0xa1   : > { %769 = vrot.lane.b32.xlu0 %v1279_v17, %s1213_s16  ;;  %559 = vrot.lane.b32.xlu1 %v1285_v18, %s1211_s14 }
  0xa5   : > { %847 = vrot.lane.b32.xlu0 %v1279_v17, %s1214_s17  ;;  %693 = vrot.lane.b32.xlu1 %v1285_v18, %s1212_s15  ;;  %s285_s15 = scalar_lea.vmem %s1460_s6, %s1273_s30 }
  0xa9   : > { %925 = vrot.lane.b32.xlu0 %v1279_v17, %s1215_s18  ;;  %771 = vrot.lane.b32.xlu1 %v1285_v18, %s1213_s16 }
  0xad   : > { %1006 = vperm.xlu0 %1197, %v1003_v19   ;;  %849 = vrot.lane.b32.xlu1 %v1285_v18, %s1214_s17  ;;  %v643_v19 = vsel %vm381_vm2, %v637_v5, 0 }
  0xb1   : > { %927 = vrot.lane.b32.xlu1 %v1285_v18, %s1215_s18  ;;  %s289_s18 = scalar_lea.vmem %s1461_s7, %s1273_s30 }
 0x103   : > { %v326_v24 = vpop.permute.xlu0 %325  ;;  %v352_v25 = vpop.permute.xlu1 %351 }
 0x107   : > { %v480_v29 = vpop.permute.xlu0 %479  ;;  %v354_v30 = vpop.permute.xlu1 %353 }
 0x108   : > { %v356_v31 = vsel %vm355_vm0, %v352_v25, %v354_v30  ;;  %v357_v32 = vsel %vm355_vm0, %v354_v30, %v352_v25  ;;  %v782_v25 = vrot.slane %v1161_v13, %v1306_v21  ;;  %v1165_v30 = vld [vmem:[%s1455_s1 + $0xe] sm:$0x3] }
 0x109   : > { %v371_v33 = vmul.f32 %v364_v26, %v357_v32  ;;  %v372_v35 = vmul.f32 %v368_v27, %v356_v31  ;;  %v1151_v31 = vld [vmem:[%s1458_s4 + $0x6] sm:$0x3] }
 0x10b   : > { %v558_v38 = vpop.permute.xlu0 %557  ;;  %v328_v39 = vpop.permute.xlu1 %327  ;;  %v376_v40 = vpack.c.bf16 %v372_v35, %v372_v35  ;;  %v375_v41 = vpack.c.bf16 %v371_v33, %v371_v33 }
 0x10c   : > { %v332_v42 = vsel %vm331_vm1, %v326_v24, %v328_v39  ;;  %v333_v43 = vsel %vm331_vm1, %v328_v39, %v326_v24 }
 0x10d   : > { %v346_v45 = vmul.f32 %v339_v34, %v333_v43  ;;  %1142 = vmatprep.subr.msk.bf16.mxu0 %vm381_vm2, %v376_v40  ;;  %v383_v46 = vsel %vm381_vm2, %v375_v41, 0  ;;  %v347_v48 = vmul.f32 %v343_v37, %v332_v42  ;;  %v860_v37 = vrot.slane %v1165_v30, %v1306_v21  ;;  %v1169_v43 = vld [vmem:[%s1455_s1 + $0x10] sm:$0x3] }
 0x10e   : > { %389 = vmatpush1.bf16.msra.mxu0 %v383_v46  ;;  %v864_v42 = vrot.slane %v1165_v30, %v1308_v22 }
 0x10f   : > { %v482_v51 = vpop.permute.xlu1 %481  ;;  %v350_v52 = vpack.c.bf16 %v347_v48, %v347_v48  ;;  %v349_v53 = vpack.c.bf16 %v346_v45, %v346_v45  ;;  %v692_v57 = vpop.permute.xlu0 %691 }
 0x110   : > { %v484_v54 = vsel %vm483_vm3, %v480_v29, %v482_v51  ;;  %v485_v55 = vsel %vm483_vm3, %v482_v51, %v480_v29  ;;  %v786_v29 = vrot.slane %v1161_v13, %v1308_v22 }
 0x111   : > { %v499_v58 = vmul.f32 %v492_v44, %v485_v55  ;;  %v500_v59 = vmul.f32 %v496_v47, %v484_v54  ;;  %1143 = vmatmul.mubr.msk.bf16.vlgmr.msra.gmra.mrb[0].mxu0 %vm377_vm4, %v1141_v50  ;;  %1144 = vmatprep.subr.msk.bf16.mxu1 %vm381_vm2, %v350_v52  ;;  %v433_v60 = vsel %vm381_vm2, %v349_v53, 0  ;;  %v1154_v44 = vld [vmem:[%s1458_s4 + $0x8] sm:$0x3]  ;;  %v938_v50 = vrot.slane %v1169_v43, %v1306_v21  ;;  %v1158_v55 = vld [vmem:[%s1458_s4 + $0xa] sm:$0x3] }
 0x112   : > { %439 = vmatpush1.bf16.msra.mxu1 %v433_v60  ;;  %546 = vmatprep.mubr.bf16.mxu0 %v1206_v1  ;;  %v942_v54 = vrot.slane %v1169_v43, %v1308_v22 }
 0x113   : > { %v503_v0 = vpack.c.bf16 %v499_v58, %v499_v58  ;;  %v504_v2 = vpack.c.bf16 %v500_v59, %v500_v59  ;;  %v560_v3 = vpop.permute.xlu1 %559  ;;  %v770_v15 = vpop.permute.xlu0 %769 }
 0x114   : > { %v562_v6 = vsel %vm561_vm5, %v558_v38, %v560_v3  ;;  %v563_v7 = vsel %vm561_vm5, %v560_v3, %v558_v38  ;;  %v1166_v3 = vld [vmem:[%s1458_s4 + $0xe] sm:$0x3] }
 0x115   : > { %v577_v9 = vmul.f32 %v570_v56, %v563_v7  ;;  %v578_v10 = vmul.f32 %v574_v61, %v562_v6  ;;  %1145 = vmatmul.mubr.msk.bf16.vlgmr.msra.gmra.mrb[0].mxu1 %vm377_vm4, %v348_v63  ;;  %1148 = vmatprep.subr.msk.bf16.mxu0 %vm381_vm2, %v504_v2  ;;  %v509_v11 = vsel %vm381_vm2, %v503_v0, 0  ;;  %v1162_v63 = vld [vmem:[%s1458_s4 + $0xc] sm:$0x3] }
 0x116   : > { %515 = vmatpush1.bf16.msra.mxu0 %v509_v11  ;;  %624 = vmatprep.mubr.bf16.mxu1 %v1206_v1 }
 0x117   : > { %v581_v16 = vpack.c.bf16 %v577_v9, %v577_v9  ;;  %v582_v17 = vpack.c.bf16 %v578_v10, %v578_v10  ;;  %v694_v18 = vpop.permute.xlu1 %693  ;;  %1155 = vmatprep.subr.msk.bf16.mxu0 %vm381_vm2, %v638_v4  ;;  %v848_v38 = vpop.permute.xlu0 %847  ;;  %v1170_v4 = vld [vmem:[%s1458_s4 + $0x10] sm:$0x3] }
 0x118   : > { %v696_v23 = vsel %vm695_vm6, %v692_v57, %v694_v18  ;;  %v697_v24 = vsel %vm695_vm6, %v694_v18, %v692_v57 }
 0x119   : > { %v711_v26 = vmul.f32 %v704_v8, %v696_v23  ;;  %v712_v27 = vmul.f32 %v708_v12, %v697_v24  ;;  %1149 = vmatmul.mubr.msk.bf16.vlgmr.msra.gmra.mrb[4].mxu0 %vm377_vm4, %v1147_v14  ;;  %1152 = vmatprep.subr.msk.bf16.mxu1 %vm381_vm2, %v582_v17  ;;  %v587_v28 = vsel %vm381_vm2, %v581_v16, 0 }
 0x11a   : > { %593 = vmatpush1.bf16.msra.mxu1 %v587_v28  ;;  %649 = vmatpush1.bf16.msra.mxu0 %v643_v19 }
 0x11b   : > { %v715_v32 = vpack.c.bf16 %v711_v26, %v711_v26  ;;  %v716_v33 = vpack.c.bf16 %v712_v27, %v712_v27  ;;  %v772_v34 = vpop.permute.xlu1 %771  ;;  %680 = vmatprep.mubr.bf16.mxu0 %v1206_v1  ;;  %v926_v56 = vpop.permute.xlu0 %925 }
 0x11c   : > { %v774_v35 = vsel %vm773_vm7, %v770_v15, %v772_v34  ;;  %v775_v36 = vsel %vm773_vm7, %v772_v34, %v770_v15 }
 0x11d   : > { %v789_v39 = vmul.f32 %v782_v25, %v774_v35  ;;  %v790_v40 = vmul.f32 %v786_v29, %v775_v36  ;;  %1153 = vmatmul.mubr.msk.bf16.vlgmr.msra.gmra.mrb[4].mxu1 %vm377_vm4, %v1151_v31  ;;  %1159 = vmatprep.subr.msk.bf16.mxu1 %vm381_vm2, %v716_v33  ;;  %v721_v41 = vsel %vm381_vm2, %v715_v32, 0 }
 0x11e   : > { %727 = vmatpush1.bf16.msra.mxu1 %v721_v41  ;;  %758 = vmatprep.mubr.bf16.mxu1 %v1206_v1 }
 0x11f   : > { %v793_v45 = vpack.c.bf16 %v789_v39, %v789_v39  ;;  %v794_v46 = vpack.c.bf16 %v790_v40, %v790_v40  ;;  %v850_v47 = vpop.permute.xlu1 %849 }
 0x120   : > { %v852_v48 = vsel %vm851_vm8, %v848_v38, %v850_v47  ;;  %v853_v49 = vsel %vm851_vm8, %v850_v47, %v848_v38 }
 0x121   : > { %v867_v51 = vmul.f32 %v860_v37, %v852_v48  ;;  %v868_v52 = vmul.f32 %v864_v42, %v853_v49  ;;  %1156 = vmatmul.mubr.msk.bf16.vlgmr.msra.gmra.mrb[8].mxu0 %vm377_vm4, %v1154_v44  ;;  %1163 = vmatprep.subr.msk.bf16.mxu0 %vm381_vm2, %v794_v46  ;;  %v799_v53 = vsel %vm381_vm2, %v793_v45, 0 }
 0x122   : > { %805 = vmatpush1.bf16.msra.mxu0 %v799_v53  ;;  %836 = vmatprep.mubr.bf16.mxu0 %v1206_v1 }
 0x123   : > { %v871_v57 = vpack.c.bf16 %v867_v51, %v867_v51  ;;  %v872_v21 = vpack.c.bf16 %v868_v52, %v868_v52  ;;  %v928_v58 = vpop.permute.xlu1 %927 }
 0x124   : > { %v930_v59 = vsel %vm929_vm9, %v926_v56, %v928_v58  ;;  %v931_v60 = vsel %vm929_vm9, %v928_v58, %v926_v56 }
 0x125   : > { %v945_v61 = vmul.f32 %v938_v50, %v930_v59  ;;  %v946_v62 = vmul.f32 %v942_v54, %v931_v60  ;;  %1160 = vmatmul.mubr.msk.bf16.vlgmr.msra.gmra.mrb[8].mxu1 %vm377_vm4, %v1158_v55  ;;  %1167 = vmatprep.subr.msk.bf16.mxu1 %vm381_vm2, %v872_v21  ;;  %v877_v22 = vsel %vm381_vm2, %v871_v57, 0 }
 0x126   : > { %883 = vmatpush1.bf16.msra.mxu1 %v877_v22  ;;  %914 = vmatprep.mubr.bf16.mxu1 %v1206_v1 }
 0x127   : > { %v949_v0 = vpack.c.bf16 %v945_v61, %v945_v61  ;;  %v950_v2 = vpack.c.bf16 %v946_v62, %v946_v62 }
 0x129   : > { %1164 = vmatmul.mubr.msk.bf16.vlgmr.msra.gmra.mrb[12].mxu0 %vm377_vm4, %v1162_v63  ;;  %1171 = vmatprep.subr.msk.bf16.mxu0 %vm381_vm2, %v950_v2  ;;  %v955_v20 = vsel %vm381_vm2, %v949_v0, 0 }
 0x12a   : > { %961 = vmatpush1.bf16.msra.mxu0 %v955_v20  ;;  %992 = vmatprep.mubr.bf16.mxu0 %v1206_v1 }
 0x12c   : > { %v1007_v56 = vpop.permute.xlu0 %1006 }
 0x12d   : > { %1168 = vmatmul.mubr.msk.bf16.vlgmr.msra.gmra.mrb[12].mxu1 %vm377_vm4, %v1166_v3 }
 0x131   : > { %1172 = vmatmul.mubr.msk.bf16.vlgmr.msra.gmra.mrb[16].mxu0 %vm377_vm4, %v1170_v4 }
 0x1e4   : > { %v422_v5 = vpop.f32.mrb[0].mxu0 }
 0x1e5   : > { %v424_v6 = vpop.f32.mrb[1].mxu0 }
 0x1e6   : > { %v426_v7 = vpop.f32.mrb[2].mxu0 }
 0x1e7   : > { %v427_v8 = vpop.f32.mrb[3].mxu0 }
 0x1e8   : > { %v472_v9 = vpop.f32.mrb[0].mxu1 }
 0x1e9   : > { %v473_v10 = vadd.f32 %v472_v9, %v422_v5  ;;  %v474_v11 = vpop.f32.mrb[1].mxu1 }
 0x1ea   : > { %v475_v12 = vadd.f32 %v474_v11, %v424_v6  ;;  %v476_v13 = vpop.f32.mrb[2].mxu1 }
 0x1eb   : > { %v477_v14 = vpop.f32.mrb[3].mxu1 }
 0x1ec   : > { %v548_v15 = vpop.f32.mrb[4].mxu0 }
 0x1ed   : > { %v555_v1 = vadd.f32 %v548_v15, %v473_v10  ;;  %v550_v16 = vpop.f32.mrb[5].mxu0 }
 0x1ee   : > { %v556_v17 = vadd.f32 %v550_v16, %v475_v12  ;;  %v552_v18 = vpop.f32.mrb[6].mxu0 }
 0x1ef   : > { %v553_v19 = vpop.f32.mrb[7].mxu0 }
 0x1f0   : > { %v626_v23 = vpop.f32.mrb[4].mxu1 }
 0x1f1   : > { %v633_v24 = vadd.f32 %v626_v23, %v555_v1  ;;  %v628_v25 = vpop.f32.mrb[5].mxu1 }
 0x1f2   : > { %v634_v26 = vadd.f32 %v628_v25, %v556_v17  ;;  %v630_v27 = vpop.f32.mrb[6].mxu1 }
 0x1f3   : > { %v631_v28 = vpop.f32.mrb[7].mxu1 }
 0x1f4   : > { %v682_v29 = vpop.f32.mrb[8].mxu0 }
 0x1f5   : > { %v689_v30 = vadd.f32 %v682_v29, %v633_v24  ;;  %v684_v31 = vpop.f32.mrb[9].mxu0 }
 0x1f6   : > { %v690_v32 = vadd.f32 %v684_v31, %v634_v26  ;;  %v686_v33 = vpop.f32.mrb[10].mxu0 }
 0x1f7   : > { %v687_v34 = vpop.f32.mrb[11].mxu0 }
 0x1f8   : > { %v760_v35 = vpop.f32.mrb[8].mxu1 }
 0x1f9   : > { %v767_v36 = vadd.f32 %v760_v35, %v689_v30  ;;  %v762_v37 = vpop.f32.mrb[9].mxu1 }
 0x1fa   : > { %v768_v38 = vadd.f32 %v762_v37, %v690_v32  ;;  %v764_v39 = vpop.f32.mrb[10].mxu1 }
 0x1fb   : > { %v765_v40 = vpop.f32.mrb[11].mxu1 }
 0x1fc   : > { %v838_v41 = vpop.f32.mrb[12].mxu0 }
 0x1fd   : > { %v845_v42 = vadd.f32 %v838_v41, %v767_v36  ;;  %v840_v43 = vpop.f32.mrb[13].mxu0 }
 0x1fe   : > { %v846_v44 = vadd.f32 %v840_v43, %v768_v38  ;;  %v842_v45 = vpop.f32.mrb[14].mxu0 }
 0x1ff   : > { %v843_v46 = vpop.f32.mrb[15].mxu0 }
 0x200   : > { %v916_v47 = vpop.f32.mrb[12].mxu1 }
 0x201   : > { %v923_v48 = vadd.f32 %v916_v47, %v845_v42  ;;  %v918_v49 = vpop.f32.mrb[13].mxu1 }
 0x202   : > { %v924_v50 = vadd.f32 %v918_v49, %v846_v44  ;;  %v920_v51 = vpop.f32.mrb[14].mxu1 }
 0x203   : > { %v921_v52 = vpop.f32.mrb[15].mxu1 }
 0x204   : > { %v994_v53 = vpop.f32.mrb[16].mxu0 }
 0x205   : > { %v1001_v54 = vadd.f32 %v994_v53, %v923_v48  ;;  %v996_v55 = vpop.f32.mrb[17].mxu0 }
 0x206   : > { %v1002_v57 = vadd.f32 %v996_v55, %v924_v50  ;;  %v998_v21 = vpop.f32.mrb[18].mxu0 }
 0x207   : > { %v1009_v58 = vadd.f32 %v1007_v56, %v1001_v54  ;;  %v999_v59 = vpop.f32.mrb[19].mxu0 }
 0x208   : > { %v1010_v60 = vadd.f32 %v1007_v56, %v1002_v57 }
 0x209   : > { %v1011_v61 = vpack.c.bf16 %v1009_v58, %v1009_v58 }
 0x20a   : > { %v1012_v62 = vpack.c.bf16 %v1010_v60, %v1010_v60  ;;  %v1173_v22 = vpack.c.bf16 %v1010_v60, %v1009_v58 }
 0x20b   : > { %v1025_v63 = vunpack.c.l.bf16 %v1011_v61 }
 0x20c   : > { %1174 = vst.sshfl [vmem:[%s285_s15] sm:$0x33 pattern:$0x76325410] %v1173_v22  ;;  %v1026_v0 = vunpack.c.l.bf16 %v1012_v62 }
 0x20d   : > { %v1028_v2 = vsel %vm1027_vm10, %v1025_v63, 0.0  ;;  %v1035_v20 = vmul.f32 %v1025_v63, %v1025_v63 }
 0x20e   : > { %v1029_v3 = vsel %vm1027_vm10, %v1026_v0, 0.0  ;;  %v1036_v4 = vmul.f32 %v1026_v0, %v1026_v0 }
 0x20f   : > { %v1030_v5 = vadd.f32 %v1029_v3, %v1028_v2  ;;  %v1037_v6 = vsel %vm1027_vm10, %v1035_v20, 0.0 }
 0x210   : > { %v1038_v7 = vsel %vm1027_vm10, %v1036_v4, 0.0 }
 0x211   : > { %1031 = vadd.xlane.f32.xlu1 %v1030_v5  ;;  %v1039_v8 = vadd.f32 %v1038_v7, %v1037_v6 }
 0x213   : > { %1040 = vadd.xlane.f32.xlu0 %v1039_v8 }
 0x29e   : > { %v1032_v9 = vpop.xlane.xlu1 %1031 }
 0x29f   : > { %1034 = vst.msk [vmem:[%s289_s18] sm:$0xf] %vm1033_vm11, %v1032_v9 }
 0x2a0   : > { %v1041_v10 = vpop.xlane.xlu0 %1040 }
 0x2a1   : > { %1043 = vst.msk [vmem:[%s289_s18] sm:$0xf] %vm1042_vm12, %v1041_v10 }
 0x2a2 PF: > { %s18_s24 = sadd.s32 1, %s1204_s24  }
 0x2a3   : > { %p15_p4 = scmp.ge.s32.totalorder %s18_s24, 4  }
 0x2a5   :  { %17 = sbr.rel (!%p15_p4) target bundleno = 1 (0x1), region = 101 }

</bundles_post_ra>
